<compile_context>
chip_gen: v7x
topology: tpu7x:2x2x1
jax: 0.10.0
libtpu: 0.0.40
codegen_flags: <defaults>
</compile_context>

<pallas_src>
import functools

import jax
import jax.numpy as jnp
from jax.experimental import pallas as pl
from jax.experimental.pallas import tpu as pltpu


def _stats_kernel(x_ref, gram_ref, sum_ref):
    # x_ref   : (Nb, C, HWp)  channels-major activations (pad lanes are zero)
    # gram_ref: (C, C)        running  sum_pixels x x^T   (output-resident)
    # sum_ref : (C, 1)        running  sum_pixels x
    @pl.when(pl.program_id(1) == 0)
    def _():
        gram_ref[...] = jnp.zeros_like(gram_ref)
        sum_ref[...] = jnp.zeros_like(sum_ref)

    nb = x_ref.shape[0]
    for i in range(nb):                       # small, statically unrolled
        x = x_ref[i]                          # (C, HWp)
        gram_ref[...] += jax.lax.dot_general(
            x, x, (((1,), (1,)), ((), ())),
            preferred_element_type=jnp.float32)
        sum_ref[...] += jnp.sum(x, axis=1, keepdims=True)


def _main_kernel(x_ref, w1_ref, shift_ref, wd_ref, mask_ref, o_ref, *, W):
    # x_ref   : (Nb, C, HWp)
    # w1_ref  : (C, C)   1x1 conv weight with the BN scale folded per out row
    # shift_ref: (C, 1)  folded BN shift
    # wd_ref  : (C, 9)   depthwise 3x3 taps, k = (dh+1)*3 + (dw+1)
    # mask_ref: (4, HWp) f32 0/1 rows: [w>=1, w<=W-2, h>=1, h<=H-2]
    # o_ref   : (Nb, C, HWp)
    HWp = x_ref.shape[-1]
    C = x_ref.shape[1]

    w1 = w1_ref[...]
    shift = shift_ref[...]
    wd = wd_ref[...]
    # Hoist mask broadcasts out of the per-image loop.
    m_wl = jnp.broadcast_to(mask_ref[0:1, :], (C, HWp))
    m_wr = jnp.broadcast_to(mask_ref[1:2, :], (C, HWp))
    m_hu = jnp.broadcast_to(mask_ref[2:3, :], (C, HWp))
    m_hd = jnp.broadcast_to(mask_ref[3:4, :], (C, HWp))

    nb = x_ref.shape[0]
    for i in range(nb):
        # --- 1x1 conv (MXU) with BN scale folded in, + shift + ReLU ---
        z = jnp.maximum(
            jnp.dot(w1, x_ref[i], preferred_element_type=jnp.float32) + shift,
            0.0)

        # --- depthwise 3x3, padding=1, via 4 lane rolls total ---
        # w-edge-masked left/right neighbor columns (2 XLU rolls).
        # pltpu.roll follows jnp.roll: roll(z, s)[p] = z[(p - s) % HWp].
        col_l = m_wl * pltpu.roll(z, shift=1, axis=1)          # z[p-1]
        col_r = m_wr * pltpu.roll(z, shift=HWp - 1, axis=1)    # z[p+1]

        def hrow(k0):
            return (wd[:, k0:k0 + 1] * col_l + wd[:, k0 + 1:k0 + 2] * z
                    + wd[:, k0 + 2:k0 + 3] * col_r)

        # dh = 0 row needs no vertical roll; for dh = -1 / +1 roll the
        # *combined* horizontal row (2 rolls instead of 6).  The w-masks were
        # applied before the vertical roll and the shift is a multiple of W,
        # so they remain aligned with the source row's columns.
        acc = hrow(3)
        acc = acc + m_hu * pltpu.roll(hrow(0), shift=W, axis=1)        # z[p-W+/-1]
        acc = acc + m_hd * pltpu.roll(hrow(6), shift=HWp - W, axis=1)  # z[p+W+/-1]
        o_ref[i] = acc


@jax.jit
def fused_forward(x_nchw, w1, gamma, beta, wd):
    """x_nchw: (N, C, H, W) float32. Returns (N, C, H, W) float32."""
    N, C, H, W = x_nchw.shape
    HW = H * W
    HWp = ((HW + 127) // 128) * 128     # lane-align for pltpu.roll / dense stores

    x3 = x_nchw.astype(jnp.float32).reshape(N, C, HW)   # free reshape, no transpose
    if HWp != HW:
        # TODO(synk): replace this XLA pad (and the final slice) with an
        # in-kernel zero-initialized VMEM scratch to save two HBM passes.
        x3 = jnp.pad(x3, ((0, 0), (0, 0), (0, HWp - HW)))

    w1f = w1.reshape(C, C).astype(jnp.float32)
    wdf = wd.reshape(C, 9).astype(jnp.float32)

    # ---- batch blocking: amortize per-grid-step overhead, bigger DMAs ----
    bytes_per_image = C * HWp * 4
    cap = int(max(1, min(8, (8 * 1024 * 1024) // (4 * bytes_per_image))))
    nb = 1
    for d in range(1, min(N, cap) + 1):
        if N % d == 0:
            nb = d
    n_blocks = N // nb
    # 2-way split of the reduction grid (uses both v7x TensorCores; on
    # single-core chips it is just a harmless 2-way serial split).
    p_split = 2 if (n_blocks >= 2 and n_blocks % 2 == 0) else 1
    steps = n_blocks // p_split

    # ---- pass 1: Gram matrix + row-sums of x (HBM-bound) ----
    gram, xsum = pl.pallas_call(
        _stats_kernel,
        grid=(p_split, steps),
        in_specs=[pl.BlockSpec((nb, C, HWp),
                               lambda p, s: (p * steps + s, 0, 0))],
        out_specs=(pl.BlockSpec((None, C, C), lambda p, s: (p, 0, 0)),
                   pl.BlockSpec((None, C, 1), lambda p, s: (p, 0, 0))),
        out_shape=(jax.ShapeDtypeStruct((p_split, C, C), jnp.float32),
                   jax.ShapeDtypeStruct((p_split, C, 1), jnp.float32)),
        compiler_params=pltpu.CompilerParams(
            dimension_semantics=("parallel", "arbitrary")),
    )(x3)

    # ---- fold BN (training-mode batch stats) into per-channel scale/shift ----
    G = jnp.sum(gram, axis=0)                         # (C, C)
    sx = jnp.sum(xsum, axis=0)                        # (C, 1)
    count = float(N * HW)                             # pad lanes contribute zero
    mean = (w1f @ sx) / count                         # (C, 1)  E[y]
    ey2 = jnp.diagonal(w1f @ G @ w1f.T)[:, None] / count   # (C, 1)  E[y^2]
    var = jnp.maximum(ey2 - mean * mean, 0.0)         # clamp one-pass variance
    inv_std = jax.lax.rsqrt(var + 1e-3)
    scale = gamma.reshape(C, 1).astype(jnp.float32) * inv_std
    shift = beta.reshape(C, 1).astype(jnp.float32) - mean * scale
    w1_scaled = scale * w1f                           # fold BN scale into the 1x1

    # Precomputed 0/1 edge-mask rows (no iota / %W / //W inside the kernel).
    lane = jnp.arange(HWp, dtype=jnp.int32)
    w_pos = lane % W
    h_pos = lane // W
    masks = jnp.stack([w_pos >= 1, w_pos <= W - 2,
                       h_pos >= 1, h_pos <= H - 2]).astype(jnp.float32)

    # ---- pass 2: scaled 1x1 conv + shift + ReLU + depthwise 3x3 ----
    out3 = pl.pallas_call(
        functools.partial(_main_kernel, W=W),
        grid=(n_blocks,),
        in_specs=[pl.BlockSpec((nb, C, HWp), lambda n: (n, 0, 0)),
                  pl.BlockSpec((C, C), lambda n: (0, 0)),
                  pl.BlockSpec((C, 1), lambda n: (0, 0)),
                  pl.BlockSpec((C, 9), lambda n: (0, 0)),
                  pl.BlockSpec((4, HWp), lambda n: (0, 0))],
        out_specs=pl.BlockSpec((nb, C, HWp), lambda n: (n, 0, 0)),
        out_shape=jax.ShapeDtypeStruct((N, C, HWp), jnp.float32),
        compiler_params=pltpu.CompilerParams(
            dimension_semantics=("parallel",)),
    )(x3, w1_scaled, shift, wdf, masks)

    if HWp != HW:
        out3 = out3[:, :, :HW]
    return out3.reshape(N, C, H, W)


def reference_forward(x, w1, gamma, beta, wd):
    """Pure-JAX reference (same semantics as the PyTorch module in train mode)."""
    C = x.shape[1]
    y = jax.lax.conv_general_dilated(
        x, w1.reshape(C, C, 1, 1), (1, 1), 'VALID',
        dimension_numbers=('NCHW', 'OIHW', 'NCHW'))
    mean = y.mean(axis=(0, 2, 3), keepdims=True)
    var = ((y - mean) ** 2).mean(axis=(0, 2, 3), keepdims=True)
    yh = (y - mean) / jnp.sqrt(var + 1e-3)
    yh = yh * gamma.reshape(1, C, 1, 1) + beta.reshape(1, C, 1, 1)
    z = jnp.maximum(yh, 0.0)
    out = jax.lax.conv_general_dilated(
        z, wd.reshape(C, 1, 3, 3), (1, 1), ((1, 1), (1, 1)),
        dimension_numbers=('NCHW', 'OIHW', 'NCHW'), feature_group_count=C)
    return out


if __name__ == "__main__":
    C = 24               # fixed by the module definition
    N, H, W = 2, 16, 16  # small demo shape; H*W is a multiple of 128 -> no pad

    key = jax.random.PRNGKey(0)
    k1, k2, k3, k4, k5 = jax.random.split(key, 5)

    # deterministic synthetic parameters (shapes from the module __init__)
    w1 = jax.random.normal(k1, (C, C), dtype=jnp.float32) * 0.2          # conv2d10
    wd = jax.random.normal(k2, (C, 1, 3, 3), dtype=jnp.float32) * 0.2    # conv2d11 (depthwise)
    gamma = 1.0 + 0.1 * jax.random.normal(k3, (C,), dtype=jnp.float32)   # bn weight
    beta = 0.1 * jax.random.normal(k4, (C,), dtype=jnp.float32)          # bn bias
    # TODO(synk): BatchNorm running-stats buffer update (training-time side
    # effect) is not modeled; it does not affect the forward output in train mode.

    x = jax.random.normal(k5, (N, C, H, W), dtype=jnp.float32)

    out = jax.block_until_ready(fused_forward(x, w1, gamma, beta, wd))
    ref = reference_forward(x, w1, gamma, beta, wd)

    assert out.shape == (N, C, H, W)
    assert jnp.allclose(out, ref, rtol=1e-3, atol=1e-3), \
        f"max abs diff {jnp.max(jnp.abs(out - ref))}"

    print("KERNEL_OK")
</pallas_src>

<mosaic_0001>
module attributes {stable_mosaic.version = 11 : i64} {
  func.func @_stats_kernel(%arg0: i32, %arg1: i32, %arg2: memref<2x24x256xf32, #tpu.memory_space<vmem>>, %arg3: memref<1x24x24xf32, #tpu.memory_space<vmem>>, %arg4: memref<1x24x1xf32, #tpu.memory_space<vmem>>) attributes {dimension_semantics = [#tpu.dimension_semantics<parallel>, #tpu.dimension_semantics<arbitrary>], iteration_bounds = array<i64: 1, 1>, scalar_prefetch = 0 : i64, scratch_operands = 0 : i64, tpu.core_type = #tpu.core_type<tc>, window_params = [{transform_indices = @transform_0, window_bounds = array<i64: 2, 24, 256>}, {transform_indices = @transform_1, window_bounds = array<i64: 1, 24, 24>}, {transform_indices = @transform_2, window_bounds = array<i64: 1, 24, 1>}]} {
    %c0_i32 = arith.constant 0 : i32
    %0 = arith.cmpi eq, %arg1, %c0_i32 : i32
    %1 = arith.extui %0 : i1 to i32
    %c0_i32_0 = arith.constant 0 : i32
    %2 = arith.cmpi ne, %1, %c0_i32_0 : i32
    scf.if %2 {
      %cst_32 = arith.constant 0.000000e+00 : f32
      %37 = vector.broadcast %cst_32 : f32 to vector<24x24xf32>
      %c0_33 = arith.constant 0 : index
      %c0_34 = arith.constant 0 : index
      %c0_35 = arith.constant 0 : index
      %38 = vector.load %arg3[%c0_33, %c0_34, %c0_35] : memref<1x24x24xf32, #tpu.memory_space<vmem>>, vector<1x24x24xf32>
      %39 = vector.shape_cast %38 : vector<1x24x24xf32> to vector<24x24xf32>
      %40 = vector.shape_cast %37 : vector<24x24xf32> to vector<1x24x24xf32>
      tpu.vector_store %arg3[%c0_33, %c0_34, %c0_35], %40 {strides = array<i32>} : memref<1x24x24xf32, #tpu.memory_space<vmem>>, vector<1x24x24xf32>,
      %cst_36 = arith.constant 0.000000e+00 : f32
      %41 = vector.broadcast %cst_36 : f32 to vector<24x1xf32>
      %c0_37 = arith.constant 0 : index
      %c0_38 = arith.constant 0 : index
      %c0_39 = arith.constant 0 : index
      %42 = vector.load %arg4[%c0_37, %c0_38, %c0_39] : memref<1x24x1xf32, #tpu.memory_space<vmem>>, vector<1x24x1xf32>
      %43 = vector.shape_cast %42 : vector<1x24x1xf32> to vector<24x1xf32>
      %44 = vector.shape_cast %41 : vector<24x1xf32> to vector<1x24x1xf32>
      tpu.vector_store %arg4[%c0_37, %c0_38, %c0_39], %44 {strides = array<i32>} : memref<1x24x1xf32, #tpu.memory_space<vmem>>, vector<1x24x1xf32>,
    } else {
    }
    %c0 = arith.constant 0 : index
    %c0_1 = arith.constant 0 : index
    %c0_2 = arith.constant 0 : index
    %3 = vector.load %arg2[%c0, %c0_1, %c0_2] : memref<2x24x256xf32, #tpu.memory_space<vmem>>, vector<1x24x256xf32>
    %4 = vector.shape_cast %3 : vector<1x24x256xf32> to vector<24x256xf32>
    %c0_3 = arith.constant 0 : index
    %c0_4 = arith.constant 0 : index
    %c0_5 = arith.constant 0 : index
    %5 = vector.load %arg3[%c0_3, %c0_4, %c0_5] : memref<1x24x24xf32, #tpu.memory_space<vmem>>, vector<1x24x24xf32>
    %6 = vector.shape_cast %5 : vector<1x24x24xf32> to vector<24x24xf32>
    %cst = arith.constant dense<0.000000e+00> : vector<24x24xf32>
    %7 = tpu.matmul %4, %4, %cst {dimension_numbers = #tpu.dot_dimension_numbers<[1], [1], [0], [0], [0, 0, 1, 0], [], []>} : vector<24x256xf32>, vector<24x256xf32>, vector<24x24xf32> -> vector<24x24xf32>
    %8 = arith.addf %6, %7 : vector<24x24xf32>
    %c0_6 = arith.constant 0 : index
    %c0_7 = arith.constant 0 : index
    %c0_8 = arith.constant 0 : index
    %9 = vector.load %arg3[%c0_6, %c0_7, %c0_8] : memref<1x24x24xf32, #tpu.memory_space<vmem>>, vector<1x24x24xf32>
    %10 = vector.shape_cast %9 : vector<1x24x24xf32> to vector<24x24xf32>
    %11 = vector.shape_cast %8 : vector<24x24xf32> to vector<1x24x24xf32>
    tpu.vector_store %arg3[%c0_6, %c0_7, %c0_8], %11 {strides = array<i32>} : memref<1x24x24xf32, #tpu.memory_space<vmem>>, vector<1x24x24xf32>,
    %c0_9 = arith.constant 0 : index
    %c0_10 = arith.constant 0 : index
    %c0_11 = arith.constant 0 : index
    %12 = vector.load %arg4[%c0_9, %c0_10, %c0_11] : memref<1x24x1xf32, #tpu.memory_space<vmem>>, vector<1x24x1xf32>
    %13 = vector.shape_cast %12 : vector<1x24x1xf32> to vector<24x1xf32>
    %cst_12 = arith.constant dense<0.000000e+00> : vector<24xf32>
    %14 = vector.multi_reduction <add>, %4, %cst_12 [1] : vector<24x256xf32> to vector<24xf32>
    %15 = vector.shape_cast %14 : vector<24xf32> to vector<24x1xf32>
    %16 = arith.addf %13, %15 : vector<24x1xf32>
    %c0_13 = arith.constant 0 : index
    %c0_14 = arith.constant 0 : index
    %c0_15 = arith.constant 0 : index
    %17 = vector.load %arg4[%c0_13, %c0_14, %c0_15] : memref<1x24x1xf32, #tpu.memory_space<vmem>>, vector<1x24x1xf32>
    %18 = vector.shape_cast %17 : vector<1x24x1xf32> to vector<24x1xf32>
    %19 = vector.shape_cast %16 : vector<24x1xf32> to vector<1x24x1xf32>
    tpu.vector_store %arg4[%c0_13, %c0_14, %c0_15], %19 {strides = array<i32>} : memref<1x24x1xf32, #tpu.memory_space<vmem>>, vector<1x24x1xf32>,
    %c1 = arith.constant 1 : index
    %c0_16 = arith.constant 0 : index
    %c0_17 = arith.constant 0 : index
    %20 = vector.load %arg2[%c1, %c0_16, %c0_17] : memref<2x24x256xf32, #tpu.memory_space<vmem>>, vector<1x24x256xf32>
    %21 = vector.shape_cast %20 : vector<1x24x256xf32> to vector<24x256xf32>
    %c0_18 = arith.constant 0 : index
    %c0_19 = arith.constant 0 : index
    %c0_20 = arith.constant 0 : index
    %22 = vector.load %arg3[%c0_18, %c0_19, %c0_20] : memref<1x24x24xf32, #tpu.memory_space<vmem>>, vector<1x24x24xf32>
    %23 = vector.shape_cast %22 : vector<1x24x24xf32> to vector<24x24xf32>
    %cst_21 = arith.constant dense<0.000000e+00> : vector<24x24xf32>
    %24 = tpu.matmul %21, %21, %cst_21 {dimension_numbers = #tpu.dot_dimension_numbers<[1], [1], [0], [0], [0, 0, 1, 0], [], []>} : vector<24x256xf32>, vector<24x256xf32>, vector<24x24xf32> -> vector<24x24xf32>
    %25 = arith.addf %23, %24 : vector<24x24xf32>
    %c0_22 = arith.constant 0 : index
    %c0_23 = arith.constant 0 : index
    %c0_24 = arith.constant 0 : index
    %26 = vector.load %arg3[%c0_22, %c0_23, %c0_24] : memref<1x24x24xf32, #tpu.memory_space<vmem>>, vector<1x24x24xf32>
    %27 = vector.shape_cast %26 : vector<1x24x24xf32> to vector<24x24xf32>
    %28 = vector.shape_cast %25 : vector<24x24xf32> to vector<1x24x24xf32>
    tpu.vector_store %arg3[%c0_22, %c0_23, %c0_24], %28 {strides = array<i32>} : memref<1x24x24xf32, #tpu.memory_space<vmem>>, vector<1x24x24xf32>,
    %c0_25 = arith.constant 0 : index
    %c0_26 = arith.constant 0 : index
    %c0_27 = arith.constant 0 : index
    %29 = vector.load %arg4[%c0_25, %c0_26, %c0_27] : memref<1x24x1xf32, #tpu.memory_space<vmem>>, vector<1x24x1xf32>
    %30 = vector.shape_cast %29 : vector<1x24x1xf32> to vector<24x1xf32>
    %cst_28 = arith.constant dense<0.000000e+00> : vector<24xf32>
    %31 = vector.multi_reduction <add>, %21, %cst_28 [1] : vector<24x256xf32> to vector<24xf32>
    %32 = vector.shape_cast %31 : vector<24xf32> to vector<24x1xf32>
    %33 = arith.addf %30, %32 : vector<24x1xf32>
    %c0_29 = arith.constant 0 : index
    %c0_30 = arith.constant 0 : index
    %c0_31 = arith.constant 0 : index
    %34 = vector.load %arg4[%c0_29, %c0_30, %c0_31] : memref<1x24x1xf32, #tpu.memory_space<vmem>>, vector<1x24x1xf32>
    %35 = vector.shape_cast %34 : vector<1x24x1xf32> to vector<24x1xf32>
    %36 = vector.shape_cast %33 : vector<24x1xf32> to vector<1x24x1xf32>
    tpu.vector_store %arg4[%c0_29, %c0_30, %c0_31], %36 {strides = array<i32>} : memref<1x24x1xf32, #tpu.memory_space<vmem>>, vector<1x24x1xf32>,
    return
  }
  func.func @transform_0(%arg0: i32, %arg1: i32) -> (i32, i32, i32) {
    %c1_i32 = arith.constant 1 : i32
    %0 = arith.muli %arg0, %c1_i32 : i32
    %1 = arith.addi %0, %arg1 : i32
    %c0_i32 = arith.constant 0 : i32
    %c0_i32_0 = arith.constant 0 : i32
    %c0_i32_1 = arith.constant 0 : i32
    return %1, %c0_i32, %c0_i32_0 : i32, i32, i32
  }
  func.func @transform_1(%arg0: i32, %arg1: i32) -> (i32, i32, i32) {
    %c0_i32 = arith.constant 0 : i32
    %c0_i32_0 = arith.constant 0 : i32
    %c0_i32_1 = arith.constant 0 : i32
    return %arg0, %c0_i32, %c0_i32_0 : i32, i32, i32
  }
  func.func @transform_2(%arg0: i32, %arg1: i32) -> (i32, i32, i32) {
    %c0_i32 = arith.constant 0 : i32
    %c0_i32_0 = arith.constant 0 : i32
    %c0_i32_1 = arith.constant 0 : i32
    return %arg0, %c0_i32, %c0_i32_0 : i32, i32, i32
  }
}

module attributes {stable_mosaic.version = 11 : i64} {
  func.func @_main_kernel(%arg0: i32, %arg1: memref<2x24x256xf32, #tpu.memory_space<vmem>>, %arg2: memref<24x24xf32, #tpu.memory_space<vmem>>, %arg3: memref<24x1xf32, #tpu.memory_space<vmem>>, %arg4: memref<24x9xf32, #tpu.memory_space<vmem>>, %arg5: memref<4x256xf32, #tpu.memory_space<vmem>>, %arg6: memref<2x24x256xf32, #tpu.memory_space<vmem>>) attributes {dimension_semantics = [#tpu.dimension_semantics<parallel>], iteration_bounds = array<i64: 1>, scalar_prefetch = 0 : i64, scratch_operands = 0 : i64, tpu.core_type = #tpu.core_type<tc>, window_params = [{transform_indices = @transform_0, window_bounds = array<i64: 2, 24, 256>}, {pipeline_mode = #tpu.pipeline_mode<synchronous>, transform_indices = @transform_1, window_bounds = array<i64: 24, 24>}, {pipeline_mode = #tpu.pipeline_mode<synchronous>, transform_indices = @transform_2, window_bounds = array<i64: 24, 1>}, {pipeline_mode = #tpu.pipeline_mode<synchronous>, transform_indices = @transform_3, window_bounds = array<i64: 24, 9>}, {pipeline_mode = #tpu.pipeline_mode<synchronous>, transform_indices = @transform_4, window_bounds = array<i64: 4, 256>}, {transform_indices = @transform_5, window_bounds = array<i64: 2, 24, 256>}]} {
    %c0 = arith.constant 0 : index
    %c0_0 = arith.constant 0 : index
    %0 = vector.load %arg2[%c0, %c0_0] : memref<24x24xf32, #tpu.memory_space<vmem>>, vector<24x24xf32>
    %c0_1 = arith.constant 0 : index
    %c0_2 = arith.constant 0 : index
    %1 = vector.load %arg3[%c0_1, %c0_2] : memref<24x1xf32, #tpu.memory_space<vmem>>, vector<24x1xf32>
    %c0_3 = arith.constant 0 : index
    %c0_4 = arith.constant 0 : index
    %2 = vector.load %arg4[%c0_3, %c0_4] : memref<24x9xf32, #tpu.memory_space<vmem>>, vector<24x9xf32>
    %c0_5 = arith.constant 0 : index
    %c0_6 = arith.constant 0 : index
    %3 = vector.load %arg5[%c0_5, %c0_6] : memref<4x256xf32, #tpu.memory_space<vmem>>, vector<1x256xf32>
    %4 = vector.shape_cast %3 : vector<1x256xf32> to vector<1x256xf32>
    %5 = vector.broadcast %4 : vector<1x256xf32> to vector<24x256xf32>
    %c1 = arith.constant 1 : index
    %c0_7 = arith.constant 0 : index
    %6 = vector.load %arg5[%c1, %c0_7] : memref<4x256xf32, #tpu.memory_space<vmem>>, vector<1x256xf32>
    %7 = vector.shape_cast %6 : vector<1x256xf32> to vector<1x256xf32>
    %8 = vector.broadcast %7 : vector<1x256xf32> to vector<24x256xf32>
    %c2 = arith.constant 2 : index
    %c0_8 = arith.constant 0 : index
    %9 = vector.load %arg5[%c2, %c0_8] : memref<4x256xf32, #tpu.memory_space<vmem>>, vector<1x256xf32>
    %10 = vector.shape_cast %9 : vector<1x256xf32> to vector<1x256xf32>
    %11 = vector.broadcast %10 : vector<1x256xf32> to vector<24x256xf32>
    %c3 = arith.constant 3 : index
    %c0_9 = arith.constant 0 : index
    %12 = vector.load %arg5[%c3, %c0_9] : memref<4x256xf32, #tpu.memory_space<vmem>>, vector<1x256xf32>
    %13 = vector.shape_cast %12 : vector<1x256xf32> to vector<1x256xf32>
    %14 = vector.broadcast %13 : vector<1x256xf32> to vector<24x256xf32>
    %c0_10 = arith.constant 0 : index
    %c0_11 = arith.constant 0 : index
    %c0_12 = arith.constant 0 : index
    %15 = vector.load %arg1[%c0_10, %c0_11, %c0_12] : memref<2x24x256xf32, #tpu.memory_space<vmem>>, vector<1x24x256xf32>
    %16 = vector.shape_cast %15 : vector<1x24x256xf32> to vector<24x256xf32>
    %cst = arith.constant dense<0.000000e+00> : vector<24x256xf32>
    %17 = tpu.matmul %0, %16, %cst {dimension_numbers = #tpu.dot_dimension_numbers<[1], [0], [0], [1], [0, 0, 1, 1], [], []>} : vector<24x24xf32>, vector<24x256xf32>, vector<24x256xf32> -> vector<24x256xf32>
    %18 = vector.broadcast %1 : vector<24x1xf32> to vector<24x256xf32>
    %19 = arith.addf %17, %18 : vector<24x256xf32>
    %cst_13 = arith.constant 0.000000e+00 : f32
    %20 = vector.broadcast %cst_13 : f32 to vector<24x256xf32>
    %21 = arith.maximumf %19, %20 : vector<24x256xf32>
    %c1_i32 = arith.constant 1 : i32
    %22 = tpu.dynamic_rotate %21 by %c1_i32 dim 1 : vector<24x256xf32>, i32 -> vector<24x256xf32>
    %23 = arith.mulf %5, %22 : vector<24x256xf32>
    %c255_i32 = arith.constant 255 : i32
    %24 = tpu.dynamic_rotate %21 by %c255_i32 dim 1 : vector<24x256xf32>, i32 -> vector<24x256xf32>
    %25 = arith.mulf %8, %24 : vector<24x256xf32>
    %26 = vector.extract_strided_slice %2 {offsets = [0, 3], sizes = [24, 1], strides = [1, 1]} : vector<24x9xf32> to vector<24x1xf32>
    %27 = vector.broadcast %26 : vector<24x1xf32> to vector<24x256xf32>
    %28 = arith.mulf %27, %23 : vector<24x256xf32>
    %29 = vector.extract_strided_slice %2 {offsets = [0, 4], sizes = [24, 1], strides = [1, 1]} : vector<24x9xf32> to vector<24x1xf32>
    %30 = vector.broadcast %29 : vector<24x1xf32> to vector<24x256xf32>
    %31 = arith.mulf %30, %21 : vector<24x256xf32>
    %32 = arith.addf %28, %31 : vector<24x256xf32>
    %33 = vector.extract_strided_slice %2 {offsets = [0, 5], sizes = [24, 1], strides = [1, 1]} : vector<24x9xf32> to vector<24x1xf32>
    %34 = vector.broadcast %33 : vector<24x1xf32> to vector<24x256xf32>
    %35 = arith.mulf %34, %25 : vector<24x256xf32>
    %36 = arith.addf %32, %35 : vector<24x256xf32>
    %37 = vector.extract_strided_slice %2 {offsets = [0, 0], sizes = [24, 1], strides = [1, 1]} : vector<24x9xf32> to vector<24x1xf32>
    %38 = vector.broadcast %37 : vector<24x1xf32> to vector<24x256xf32>
    %39 = arith.mulf %38, %23 : vector<24x256xf32>
    %40 = vector.extract_strided_slice %2 {offsets = [0, 1], sizes = [24, 1], strides = [1, 1]} : vector<24x9xf32> to vector<24x1xf32>
    %41 = vector.broadcast %40 : vector<24x1xf32> to vector<24x256xf32>
    %42 = arith.mulf %41, %21 : vector<24x256xf32>
    %43 = arith.addf %39, %42 : vector<24x256xf32>
    %44 = vector.extract_strided_slice %2 {offsets = [0, 2], sizes = [24, 1], strides = [1, 1]} : vector<24x9xf32> to vector<24x1xf32>
    %45 = vector.broadcast %44 : vector<24x1xf32> to vector<24x256xf32>
    %46 = arith.mulf %45, %25 : vector<24x256xf32>
    %47 = arith.addf %43, %46 : vector<24x256xf32>
    %c16_i32 = arith.constant 16 : i32
    %48 = tpu.dynamic_rotate %47 by %c16_i32 dim 1 : vector<24x256xf32>, i32 -> vector<24x256xf32>
    %49 = arith.mulf %11, %48 : vector<24x256xf32>
    %50 = arith.addf %36, %49 : vector<24x256xf32>
    %51 = vector.extract_strided_slice %2 {offsets = [0, 6], sizes = [24, 1], strides = [1, 1]} : vector<24x9xf32> to vector<24x1xf32>
    %52 = vector.broadcast %51 : vector<24x1xf32> to vector<24x256xf32>
    %53 = arith.mulf %52, %23 : vector<24x256xf32>
    %54 = vector.extract_strided_slice %2 {offsets = [0, 7], sizes = [24, 1], strides = [1, 1]} : vector<24x9xf32> to vector<24x1xf32>
    %55 = vector.broadcast %54 : vector<24x1xf32> to vector<24x256xf32>
    %56 = arith.mulf %55, %21 : vector<24x256xf32>
    %57 = arith.addf %53, %56 : vector<24x256xf32>
    %58 = vector.extract_strided_slice %2 {offsets = [0, 8], sizes = [24, 1], strides = [1, 1]} : vector<24x9xf32> to vector<24x1xf32>
    %59 = vector.broadcast %58 : vector<24x1xf32> to vector<24x256xf32>
    %60 = arith.mulf %59, %25 : vector<24x256xf32>
    %61 = arith.addf %57, %60 : vector<24x256xf32>
    %c240_i32 = arith.constant 240 : i32
    %62 = tpu.dynamic_rotate %61 by %c240_i32 dim 1 : vector<24x256xf32>, i32 -> vector<24x256xf32>
    %63 = arith.mulf %14, %62 : vector<24x256xf32>
    %64 = arith.addf %50, %63 : vector<24x256xf32>
    %c0_14 = arith.constant 0 : index
    %c0_15 = arith.constant 0 : index
    %c0_16 = arith.constant 0 : index
    %65 = vector.load %arg6[%c0_14, %c0_15, %c0_16] : memref<2x24x256xf32, #tpu.memory_space<vmem>>, vector<1x24x256xf32>
    %66 = vector.shape_cast %65 : vector<1x24x256xf32> to vector<24x256xf32>
    %67 = vector.shape_cast %64 : vector<24x256xf32> to vector<1x24x256xf32>
    tpu.vector_store %arg6[%c0_14, %c0_15, %c0_16], %67 {strides = array<i32>} : memref<2x24x256xf32, #tpu.memory_space<vmem>>, vector<1x24x256xf32>,
    %c1_17 = arith.constant 1 : index
    %c0_18 = arith.constant 0 : index
    %c0_19 = arith.constant 0 : index
    %68 = vector.load %arg1[%c1_17, %c0_18, %c0_19] : memref<2x24x256xf32, #tpu.memory_space<vmem>>, vector<1x24x256xf32>
    %69 = vector.shape_cast %68 : vector<1x24x256xf32> to vector<24x256xf32>
    %cst_20 = arith.constant dense<0.000000e+00> : vector<24x256xf32>
    %70 = tpu.matmul %0, %69, %cst_20 {dimension_numbers = #tpu.dot_dimension_numbers<[1], [0], [0], [1], [0, 0, 1, 1], [], []>} : vector<24x24xf32>, vector<24x256xf32>, vector<24x256xf32> -> vector<24x256xf32>
    %71 = vector.broadcast %1 : vector<24x1xf32> to vector<24x256xf32>
    %72 = arith.addf %70, %71 : vector<24x256xf32>
    %cst_21 = arith.constant 0.000000e+00 : f32
    %73 = vector.broadcast %cst_21 : f32 to vector<24x256xf32>
    %74 = arith.maximumf %72, %73 : vector<24x256xf32>
    %c1_i32_22 = arith.constant 1 : i32
    %75 = tpu.dynamic_rotate %74 by %c1_i32_22 dim 1 : vector<24x256xf32>, i32 -> vector<24x256xf32>
    %76 = arith.mulf %5, %75 : vector<24x256xf32>
    %c255_i32_23 = arith.constant 255 : i32
    %77 = tpu.dynamic_rotate %74 by %c255_i32_23 dim 1 : vector<24x256xf32>, i32 -> vector<24x256xf32>
    %78 = arith.mulf %8, %77 : vector<24x256xf32>
    %79 = vector.extract_strided_slice %2 {offsets = [0, 3], sizes = [24, 1], strides = [1, 1]} : vector<24x9xf32> to vector<24x1xf32>
    %80 = vector.broadcast %79 : vector<24x1xf32> to vector<24x256xf32>
    %81 = arith.mulf %80, %76 : vector<24x256xf32>
    %82 = vector.extract_strided_slice %2 {offsets = [0, 4], sizes = [24, 1], strides = [1, 1]} : vector<24x9xf32> to vector<24x1xf32>
    %83 = vector.broadcast %82 : vector<24x1xf32> to vector<24x256xf32>
    %84 = arith.mulf %83, %74 : vector<24x256xf32>
    %85 = arith.addf %81, %84 : vector<24x256xf32>
    %86 = vector.extract_strided_slice %2 {offsets = [0, 5], sizes = [24, 1], strides = [1, 1]} : vector<24x9xf32> to vector<24x1xf32>
    %87 = vector.broadcast %86 : vector<24x1xf32> to vector<24x256xf32>
    %88 = arith.mulf %87, %78 : vector<24x256xf32>
    %89 = arith.addf %85, %88 : vector<24x256xf32>
    %90 = vector.extract_strided_slice %2 {offsets = [0, 0], sizes = [24, 1], strides = [1, 1]} : vector<24x9xf32> to vector<24x1xf32>
    %91 = vector.broadcast %90 : vector<24x1xf32> to vector<24x256xf32>
    %92 = arith.mulf %91, %76 : vector<24x256xf32>
    %93 = vector.extract_strided_slice %2 {offsets = [0, 1], sizes = [24, 1], strides = [1, 1]} : vector<24x9xf32> to vector<24x1xf32>
    %94 = vector.broadcast %93 : vector<24x1xf32> to vector<24x256xf32>
    %95 = arith.mulf %94, %74 : vector<24x256xf32>
    %96 = arith.addf %92, %95 : vector<24x256xf32>
    %97 = vector.extract_strided_slice %2 {offsets = [0, 2], sizes = [24, 1], strides = [1, 1]} : vector<24x9xf32> to vector<24x1xf32>
    %98 = vector.broadcast %97 : vector<24x1xf32> to vector<24x256xf32>
    %99 = arith.mulf %98, %78 : vector<24x256xf32>
    %100 = arith.addf %96, %99 : vector<24x256xf32>
    %c16_i32_24 = arith.constant 16 : i32
    %101 = tpu.dynamic_rotate %100 by %c16_i32_24 dim 1 : vector<24x256xf32>, i32 -> vector<24x256xf32>
    %102 = arith.mulf %11, %101 : vector<24x256xf32>
    %103 = arith.addf %89, %102 : vector<24x256xf32>
    %104 = vector.extract_strided_slice %2 {offsets = [0, 6], sizes = [24, 1], strides = [1, 1]} : vector<24x9xf32> to vector<24x1xf32>
    %105 = vector.broadcast %104 : vector<24x1xf32> to vector<24x256xf32>
    %106 = arith.mulf %105, %76 : vector<24x256xf32>
    %107 = vector.extract_strided_slice %2 {offsets = [0, 7], sizes = [24, 1], strides = [1, 1]} : vector<24x9xf32> to vector<24x1xf32>
    %108 = vector.broadcast %107 : vector<24x1xf32> to vector<24x256xf32>
    %109 = arith.mulf %108, %74 : vector<24x256xf32>
    %110 = arith.addf %106, %109 : vector<24x256xf32>
    %111 = vector.extract_strided_slice %2 {offsets = [0, 8], sizes = [24, 1], strides = [1, 1]} : vector<24x9xf32> to vector<24x1xf32>
    %112 = vector.broadcast %111 : vector<24x1xf32> to vector<24x256xf32>
    %113 = arith.mulf %112, %78 : vector<24x256xf32>
    %114 = arith.addf %110, %113 : vector<24x256xf32>
    %c240_i32_25 = arith.constant 240 : i32
    %115 = tpu.dynamic_rotate %114 by %c240_i32_25 dim 1 : vector<24x256xf32>, i32 -> vector<24x256xf32>
    %116 = arith.mulf %14, %115 : vector<24x256xf32>
    %117 = arith.addf %103, %116 : vector<24x256xf32>
    %c1_26 = arith.constant 1 : index
    %c0_27 = arith.constant 0 : index
    %c0_28 = arith.constant 0 : index
    %118 = vector.load %arg6[%c1_26, %c0_27, %c0_28] : memref<2x24x256xf32, #tpu.memory_space<vmem>>, vector<1x24x256xf32>
    %119 = vector.shape_cast %118 : vector<1x24x256xf32> to vector<24x256xf32>
    %120 = vector.shape_cast %117 : vector<24x256xf32> to vector<1x24x256xf32>
    tpu.vector_store %arg6[%c1_26, %c0_27, %c0_28], %120 {strides = array<i32>} : memref<2x24x256xf32, #tpu.memory_space<vmem>>, vector<1x24x256xf32>,
    return
  }
  func.func @transform_0(%arg0: i32) -> (i32, i32, i32) {
    %c0_i32 = arith.constant 0 : i32
    %c0_i32_0 = arith.constant 0 : i32
    %c0_i32_1 = arith.constant 0 : i32
    return %arg0, %c0_i32, %c0_i32_0 : i32, i32, i32
  }
  func.func @transform_1(%arg0: i32) -> (i32, i32) {
    %c0_i32 = arith.constant 0 : i32
    %c0_i32_0 = arith.constant 0 : i32
    %c0_i32_1 = arith.constant 0 : i32
    return %c0_i32, %c0_i32_0 : i32, i32
  }
  func.func @transform_2(%arg0: i32) -> (i32, i32) {
    %c0_i32 = arith.constant 0 : i32
    %c0_i32_0 = arith.constant 0 : i32
    %c0_i32_1 = arith.constant 0 : i32
    return %c0_i32, %c0_i32_0 : i32, i32
  }
  func.func @transform_3(%arg0: i32) -> (i32, i32) {
    %c0_i32 = arith.constant 0 : i32
    %c0_i32_0 = arith.constant 0 : i32
    %c0_i32_1 = arith.constant 0 : i32
    return %c0_i32, %c0_i32_0 : i32, i32
  }
  func.func @transform_4(%arg0: i32) -> (i32, i32) {
    %c0_i32 = arith.constant 0 : i32
    %c0_i32_0 = arith.constant 0 : i32
    %c0_i32_1 = arith.constant 0 : i32
    return %c0_i32, %c0_i32_0 : i32, i32
  }
  func.func @transform_5(%arg0: i32) -> (i32, i32, i32) {
    %c0_i32 = arith.constant 0 : i32
    %c0_i32_0 = arith.constant 0 : i32
    %c0_i32_1 = arith.constant 0 : i32
    return %arg0, %c0_i32, %c0_i32_0 : i32, i32, i32
  }
}

</mosaic_0001>

<bundles_post_ra>
// kernel: fused_forward.2
= control target key start
LH: loop header
LB: loop body
LE: loop exit
PB: predicated region body
PF: predicated region fallthrough
CT: control target
= control target key end

     0   :  { %vm39_vm0 = vcmask 195584   ;;  %v305_v3 = vmov 0.0   ;;  %vm43_vm1 = vcmask 7168   ;;  %s465_s0 = inlined_call_operand.vmem [shape: f32[2,24,256], index: 0, kind: input, shape index: {}]   ;;  %s466_s1 = inlined_call_operand.vmem [shape: f32[1,24,24], index: 1, kind: output, shape index: {0}]   ;;  %s467_s2 = inlined_call_operand.vmem [shape: f32[1,24,1], index: 2, kind: output, shape index: {1}]  }
   0x1   :  { %v48_v0 = vld [vmem:[%s465_s0 + $0x8] sm:$0xff]  ;;  %v50_v1 = vld [vmem:[%s465_s0 + $0x18] sm:$0xff]  ;;  %v47_v2 = vld [vmem:[%s465_s0] sm:$0xff]  ;;  %40 = vst.msk [vmem:[%s466_s1] sm:$0xff] %vm39_vm0, %v305_v3 }
   0x2   :  { %41 = vst.msk [vmem:[%s466_s1 + $0x8] sm:$0xff] %vm39_vm0, %v305_v3  ;;  %42 = vst.msk [vmem:[%s466_s1 + $0x10] sm:$0xff] %vm39_vm0, %v305_v3  ;;  %v296_v4 = vpack.c.bf16 %v50_v1, %v48_v0  ;;  %v49_v5 = vld [vmem:[%s465_s0 + $0x10] sm:$0xff]  ;;  %v52_v6 = vld [vmem:[%s465_s0 + $0x28] sm:$0xff]  ;;  %120 = vmatprep.mubr.f32.mxu0 %v48_v0  ;;  %v146_v8 = vadd.f32 %v48_v0, %v47_v2 }
   0x3   :  { %v51_v7 = vld [vmem:[%s465_s0 + $0x20] sm:$0xff]  ;;  %v298_v9 = vpack.c.bf16 %v49_v5, %v47_v2  ;;  %v291_v10 = vld [vmem:[%s465_s0 + $0x38] sm:$0xff]  ;;  %v293_v11 = vld [vmem:[%s465_s0 + $0x48] sm:$0xff]  ;;  %v149_v18 = vadd.f32 %v50_v1, %v49_v5  ;;  %44 = vst.msk [vmem:[%s467_s2] sm:$0xff] %vm43_vm1, %v305_v3 }
   0x4   :  { %v290_v12 = vld [vmem:[%s465_s0 + $0x30] sm:$0xff]  ;;  %v152_v13 = vadd.f32 %v52_v6, %v51_v7  ;;  %297 = vmatprep.subr.bf16.mxu0 %v296_v4  ;;  %v300_v14 = vpack.c.bf16 %v293_v11, %v291_v10  ;;  %v292_v15 = vld [vmem:[%s465_s0 + $0x40] sm:$0xff]  ;;  %236 = vmatprep.mubr.f32.mxu1 %v291_v10  ;;  %v295_v17 = vld [vmem:[%s465_s0 + $0x58] sm:$0xff]  ;;  %45 = vst.msk [vmem:[%s467_s2 + $0x8] sm:$0xff] %vm43_vm1, %v305_v3 }
   0x5   :  { %299 = vmatpush1.bf16.xpose.msra.mxu0 %v298_v9  ;;  %v302_v16 = vpack.c.bf16 %v292_v15, %v290_v12  ;;  %147 = vadd.xlane.f32.xlu0 %v146_v8  ;;  %v261_v19 = vadd.f32 %v291_v10, %v290_v12  ;;  %v264_v20 = vadd.f32 %v293_v11, %v292_v15  ;;  %v294_v21 = vld [vmem:[%s465_s0 + $0x50] sm:$0xff] }
   0x6   :  { %60 = vmatprep.subr.mxu0 %v52_v6  ;;  %301 = vmatprep.subr.bf16.mxu1 %v300_v14  ;;  %v267_v22 = vadd.f32 %v295_v17, %v294_v21  ;;  %46 = vst.msk [vmem:[%s467_s2 + $0x10] sm:$0xff] %vm43_vm1, %v305_v3 }
   0x7   :  { %303 = vmatpush1.bf16.xpose.msra.mxu1 %v302_v16  ;;  %153 = vadd.xlane.f32.xlu1 %v152_v13 }
   0x8   :  { %176 = vmatprep.subr.mxu1 %v295_v17  ;;  %v53_v41 = vld [vmem:[%s466_s1] sm:$0xff] }
   0x9   :  { %150 = vadd.xlane.f32.xlu0 %v149_v18  ;;  %v54_v45 = vld [vmem:[%s466_s1 + $0x8] sm:$0xff]  ;;  %v55_v51 = vld [vmem:[%s466_s1 + $0x10] sm:$0xff] }
   0xa   :  { %v143_v23 = vld [vmem:[%s467_s2] sm:$0xff] }
   0xb   :  { %262 = vadd.xlane.f32.xlu1 %v261_v19  ;;  %v144_v28 = vld [vmem:[%s467_s2 + $0x8] sm:$0xff] }
   0xd   :  { %61 = vmatpush1.xpose.msra.mxu0 %v51_v7  ;;  %265 = vadd.xlane.f32.xlu0 %v264_v20  ;;  %v145_v25 = vld [vmem:[%s467_s2 + $0x10] sm:$0xff] }
   0xf   :  { %177 = vmatpush1.xpose.msra.mxu1 %v294_v21  ;;  %268 = vadd.xlane.f32.xlu1 %v267_v22 }
  0x10   :  { %121 = vmatmul.mubr.f32.vlgmr.msra.gmra.mrb[0].mxu0 %v47_v2 }
  0x11   :  { %125 = vmatprep.mubr.f32.mxu0 %v50_v1 }
  0x12   :  { %237 = vmatmul.mubr.f32.vlgmr.msra.gmra.mrb[0].mxu1 %v290_v12 }
  0x13   :  { %241 = vmatprep.mubr.f32.mxu1 %v293_v11 }
  0x14   :  { %126 = vmatmul.mubr.f32.gmra.mrb[2].mxu0 %v49_v5 }
  0x15   :  { %130 = vmatprep.mubr.f32.mxu0 %v52_v6 }
  0x16   :  { %242 = vmatmul.mubr.f32.gmra.mrb[2].mxu1 %v292_v15 }
  0x17   :  { %246 = vmatprep.mubr.f32.mxu1 %v295_v17 }
  0x18   :  { %131 = vmatmul.mubr.f32.gmra.mrb[4].mxu0 %v51_v7 }
  0x1a   :  { %247 = vmatmul.mubr.f32.gmra.mrb[4].mxu1 %v294_v21 }
  0x92   :  { %v148_v24 = vpop.xlane.xlu0 %147 }
  0x93   :  { %v155_v26 = vadd.f32 %v148_v24, %v143_v23 }
  0x94   :  { %v154_v27 = vpop.xlane.xlu1 %153 }
  0x95   :  { %159 = vst.msk [vmem:[%s467_s2] sm:$0xff] %vm43_vm1, %v155_v26  ;;  %v157_v29 = vadd.f32 %v154_v27, %v145_v25 }
  0x96   :  { %v151_v30 = vpop.xlane.xlu0 %150 }
  0x97   :  { %161 = vst.msk [vmem:[%s467_s2 + $0x10] sm:$0xff] %vm43_vm1, %v157_v29  ;;  %v156_v31 = vadd.f32 %v151_v30, %v144_v28 }
  0x98   :  { %v263_v32 = vpop.xlane.xlu1 %262 }
  0x99   :  { %160 = vst.msk [vmem:[%s467_s2 + $0x8] sm:$0xff] %vm43_vm1, %v156_v31 }
  0x9a   :  { %v266_v37 = vpop.xlane.xlu0 %265 }
  0x9c   :  { %v258_v33 = vld [vmem:[%s467_s2] sm:$0xff]  ;;  %v269_v34 = vpop.xlane.xlu1 %268 }
  0x9d   :  { %v270_v35 = vadd.f32 %v263_v32, %v258_v33 }
  0x9e   :  { %v260_v36 = vld [vmem:[%s467_s2 + $0x10] sm:$0xff] }
  0x9f   :  { %273 = vst.msk [vmem:[%s467_s2] sm:$0xff] %vm43_vm1, %v270_v35  ;;  %v272_v38 = vadd.f32 %v269_v34, %v260_v36 }
  0xa0   :  { %v259_v39 = vld [vmem:[%s467_s2 + $0x8] sm:$0xff] }
  0xa1   :  { %275 = vst.msk [vmem:[%s467_s2 + $0x10] sm:$0xff] %vm43_vm1, %v272_v38  ;;  %v271_v40 = vadd.f32 %v266_v37, %v259_v39 }
  0xa3   :  { %274 = vst.msk [vmem:[%s467_s2 + $0x8] sm:$0xff] %vm43_vm1, %v271_v40 }
  0xe3   :  { %v122_v42 = vpop.f32.mrb[0].mxu0 }
  0xe4   :  { %v136_v43 = vadd.f32 %v122_v42, %v53_v41  ;;  %v124_v44 = vpop.f32.mrb[1].mxu0 }
  0xe5   :  { %v238_v46 = vpop.f32.mrb[0].mxu1 }
  0xe6   :  { %140 = vst.msk [vmem:[%s466_s1] sm:$0xff] %vm39_vm0, %v136_v43  ;;  %v240_v47 = vpop.f32.mrb[1].mxu1 }
  0xe7   :  { %v127_v48 = vpop.f32.mrb[2].mxu0 }
  0xe8   :  { %v137_v49 = vadd.f32 %v127_v48, %v54_v45  ;;  %v129_v50 = vpop.f32.mrb[3].mxu0 }
  0xe9   :  { %v243_v52 = vpop.f32.mrb[2].mxu1 }
  0xea   :  { %141 = vst.msk [vmem:[%s466_s1 + $0x8] sm:$0xff] %vm39_vm0, %v137_v49  ;;  %v245_v53 = vpop.f32.mrb[3].mxu1 }
  0xeb   :  { %v132_v54 = vpop.f32.mrb[4].mxu0 }
  0xec   :  { %v138_v55 = vadd.f32 %v132_v54, %v55_v51  ;;  %v134_v56 = vpop.f32.mrb[5].mxu0 }
  0xed   :  { %v169_v57 = vld [vmem:[%s466_s1] sm:$0xff]  ;;  %v248_v58 = vpop.f32.mrb[4].mxu1 }
  0xee   :  { %142 = vst.msk [vmem:[%s466_s1 + $0x10] sm:$0xff] %vm39_vm0, %v138_v55  ;;  %v252_v59 = vadd.f32 %v238_v46, %v169_v57  ;;  %v250_v60 = vpop.f32.mrb[5].mxu1 }
  0xf0   :  { %255 = vst.msk [vmem:[%s466_s1] sm:$0xff] %vm39_vm0, %v252_v59 }
  0xf1   :  { %v170_v61 = vld [vmem:[%s466_s1 + $0x8] sm:$0xff] }
  0xf2   :  { %v253_v62 = vadd.f32 %v243_v52, %v170_v61 }
  0xf4   :  { %256 = vst.msk [vmem:[%s466_s1 + $0x8] sm:$0xff] %vm39_vm0, %v253_v62 }
  0xf5   :  { %v171_v63 = vld [vmem:[%s466_s1 + $0x10] sm:$0xff] }
  0xf6   :  { %v254_v0 = vadd.f32 %v248_v58, %v171_v63 }
  0xf8   :  { %257 = vst.msk [vmem:[%s466_s1 + $0x10] sm:$0xff] %vm39_vm0, %v254_v0 }

// kernel: fused_forward.3
= control target key start
LH: loop header
LB: loop body
LE: loop exit
PB: predicated region body
PF: predicated region fallthrough
CT: control target
= control target key end

     0   :  { %v888_v3 = vmov 0.0   ;;  %v889_v8 = vmov 0   ;;  %v890_v9 = vmov 3   ;;  %vm101_vm0 = vcmask 195584   ;;  %s899_s7 = smov 127   ;;  %s900_s12 = smov 16   ;;  %s1694_s0 = inlined_call_operand.vmem [shape: f32[2,24,256], index: 0, kind: input, shape index: {}]   ;;  %s1695_s2 = inlined_call_operand.vmem [shape: f32[24,1], index: 2, kind: input, shape index: {}]   ;;  %s1696_s1 = inlined_call_operand.vmem [shape: f32[24,24], index: 1, kind: input, shape index: {}]   ;;  %s1697_s3 = inlined_call_operand.vmem [shape: f32[24,9], index: 3, kind: input, shape index: {}]   ;;  %s1698_s4 = inlined_call_operand.vmem [shape: f32[4,256], index: 4, kind: input, shape index: {}]   ;;  %s1699_s5 = inlined_call_operand.vmem [shape: f32[2,24,256], index: 5, kind: output, shape index: {}]  }
   0x1   :  { %v81_v0 = vld [vmem:[%s1694_s0 + $0x8] sm:$0xff]  ;;  %v83_v1 = vld [vmem:[%s1694_s0 + $0x18] sm:$0xff]  ;;  %175 = vmatprep.mubr.f32.mxu0 %v888_v3  ;;  %592 = vmatprep.mubr.f32.mxu1 %v888_v3  ;;  %v80_v6 = vld [vmem:[%s1694_s0] sm:$0xff]  ;;  %v891_v24 = vmov 4   ;;  %v892_v27 = vmov 5   ;;  %v893_v30 = vmov 1  }
   0x2   :  { %v833_v2 = vld [vmem:[%s1694_s0 + $0x38] sm:$0xff]  ;;  %v847_v4 = vpack.c.bf16 %v83_v1, %v81_v0  ;;  %v835_v5 = vld [vmem:[%s1694_s0 + $0x48] sm:$0xff]  ;;  %v82_v7 = vld [vmem:[%s1694_s0 + $0x10] sm:$0xff]  ;;  %869 = vset.pattern.permute.xlu1 %v889_v8  ;;  %871 = vset.pattern.permute.xlu0 %v890_v9  ;;  %v894_v31 = vmov 2   ;;  %v895_v32 = vmov 6   ;;  %v896_v33 = vmov 7  }
   0x3   :  { %v851_v10 = vpack.c.bf16 %v835_v5, %v833_v2  ;;  %v849_v11 = vpack.c.bf16 %v82_v7, %v80_v6  ;;  %v832_v12 = vld [vmem:[%s1694_s0 + $0x30] sm:$0xff]  ;;  %v834_v13 = vld [vmem:[%s1694_s0 + $0x40] sm:$0xff]  ;;  %v85_v14 = vld [vmem:[%s1694_s0 + $0x28] sm:$0xff]  ;;  %v897_v34 = vmov 8   ;;  %s901_s13 = smov 112  }
   0x4   :  { %848 = vmatprep.subr.bf16.mxu0 %v847_v4  ;;  %v853_v15 = vpack.c.bf16 %v834_v13, %v832_v12  ;;  %v837_v16 = vld [vmem:[%s1694_s0 + $0x58] sm:$0xff]  ;;  %v25_v17 = vld [vmem:[%s1695_s2 + $0x10] sm:$0xff]  ;;  %v84_v18 = vld [vmem:[%s1694_s0 + $0x20] sm:$0xff] }
   0x5   :  { %852 = vmatprep.subr.bf16.mxu1 %v851_v10  ;;  %850 = vmatpush1.bf16.msra.mxu0 %v849_v11  ;;  %v836_v19 = vld [vmem:[%s1694_s0 + $0x50] sm:$0xff]  ;;  %v20_v20 = vld [vmem:[%s1696_s1] sm:$0xff]  ;;  %v27_v21 = vld [vmem:[%s1697_s3 + $0x8] sm:$0xff] }
   0x6   :  { %854 = vmatpush1.bf16.msra.mxu1 %v853_v15  ;;  %115 = vmatprep.subr.mxu0 %v85_v14  ;;  %v982_v22 = vld [vmem:[%s1697_s3] sm:$0xff]  ;;  %v21_v23 = vld [vmem:[%s1696_s1 + $0x8] sm:$0xff]  ;;  %v28_v25 = vld [vmem:[%s1697_s3 + $0x10] sm:$0xff] }
   0x7   :  { %532 = vmatprep.subr.mxu1 %v837_v16  ;;  %98 = vperm.xlu1 %869, %v25_v17   ;;  %v22_v26 = vld [vmem:[%s1696_s1 + $0x10] sm:$0xff]  ;;  %v23_v28 = vld [vmem:[%s1695_s2] sm:$0xff]  ;;  %v24_v29 = vld [vmem:[%s1695_s2 + $0x8] sm:$0xff]  ;;  %s898_s2 = smov 1  }
   0x8   :  { %259 = vperm.xlu0 %871, %v27_v21  }
   0x9   :  { %116 = vmatpush1.msra.mxu0 %v84_v18 }
   0xa   :  { %533 = vmatpush1.msra.mxu1 %v836_v19  ;;  %829 = vmatmul.mubr.msk.f32.vlgmr.msra.gmra.mrb[0].mxu0 %vm101_vm0, %v20_v20 }
   0xb   :  { %838 = vmatmul.mubr.msk.f32.vlgmr.msra.gmra.mrb[0].mxu1 %vm101_vm0, %v20_v20  ;;  %181 = vmatprep.mubr.f32.mxu0 %v888_v3 }
   0xc   :  { %598 = vmatprep.mubr.f32.mxu1 %v888_v3  ;;  %870 = vset.pattern.permute.xlu1 %v890_v9 }
   0xd   :  { %254 = vperm.xlu1 %870, %v982_v22   ;;  %873 = vset.pattern.permute.xlu0 %v891_v24 }
   0xe   :  { %830 = vmatmul.mubr.msk.f32.gmra.mrb[2].mxu0 %vm101_vm0, %v21_v23  ;;  %278 = vperm.xlu0 %873, %v27_v21  }
   0xf   :  { %839 = vmatmul.mubr.msk.f32.gmra.mrb[2].mxu1 %vm101_vm0, %v21_v23  ;;  %187 = vmatprep.mubr.f32.mxu0 %v888_v3 }
  0x10   :  { %604 = vmatprep.mubr.f32.mxu1 %v888_v3 }
  0x11   :  { %264 = vperm.xlu1 %870, %v28_v25  }
  0x12   :  { %831 = vmatmul.mubr.msk.f32.gmra.mrb[4].mxu0 %vm101_vm0, %v22_v26  ;;  %875 = vset.pattern.permute.xlu0 %v892_v27 }
  0x13   :  { %840 = vmatmul.mubr.msk.f32.gmra.mrb[4].mxu1 %vm101_vm0, %v22_v26  ;;  %302 = vperm.xlu0 %875, %v27_v21  }
  0x15   :  { %872 = vset.pattern.permute.xlu1 %v891_v24 }
  0x16   :  { %274 = vperm.xlu1 %872, %v982_v22  }
  0x17   :  { %876 = vset.pattern.permute.xlu0 %v889_v8 }
  0x18   :  { %88 = vperm.xlu0 %876, %v23_v28  }
  0x1a   :  { %282 = vperm.xlu1 %872, %v28_v25  }
  0x1c   :  { %93 = vperm.xlu0 %876, %v24_v29  }
  0x1e   :  { %874 = vset.pattern.permute.xlu1 %v892_v27 }
  0x1f   :  { %298 = vperm.xlu1 %874, %v982_v22  }
  0x20   :  { %326 = vperm.xlu0 %876, %v27_v21  }
  0x23   :  { %306 = vperm.xlu1 %874, %v28_v25  }
  0x24   :  { %879 = vset.pattern.permute.xlu0 %v893_v30 }
  0x25   :  { %344 = vperm.xlu0 %879, %v27_v21  }
  0x27   :  { %877 = vset.pattern.permute.xlu1 %v889_v8 }
  0x28   :  { %322 = vperm.xlu1 %877, %v982_v22  }
  0x29   :  { %881 = vset.pattern.permute.xlu0 %v894_v31 }
  0x2a   :  { %368 = vperm.xlu0 %881, %v27_v21  }
  0x2c   :  { %330 = vperm.xlu1 %877, %v28_v25  }
  0x2e   :  { %883 = vset.pattern.permute.xlu0 %v895_v32 }
  0x2f   :  { %423 = vperm.xlu0 %883, %v27_v21  }
  0x30   :  { %878 = vset.pattern.permute.xlu1 %v893_v30 }
  0x31   :  { %340 = vperm.xlu1 %878, %v982_v22  }
  0x33   :  { %885 = vset.pattern.permute.xlu0 %v896_v33 }
  0x34   :  { %441 = vperm.xlu0 %885, %v27_v21  }
  0x35   :  { %348 = vperm.xlu1 %878, %v28_v25  }
  0x38   :  { %887 = vset.pattern.permute.xlu0 %v897_v34 }
  0x39   :  { %880 = vset.pattern.permute.xlu1 %v894_v31  ;;  %465 = vperm.xlu0 %887, %v27_v21  }
  0x3a   :  { %364 = vperm.xlu1 %880, %v982_v22  }
  0x3e   :  { %372 = vperm.xlu1 %880, %v28_v25  }
  0x42   :  { %882 = vset.pattern.permute.xlu1 %v895_v32 }
  0x43   :  { %419 = vperm.xlu1 %882, %v982_v22  }
  0x47   :  { %427 = vperm.xlu1 %882, %v28_v25  }
  0x4b   :  { %884 = vset.pattern.permute.xlu1 %v896_v33 }
  0x4c   :  { %437 = vperm.xlu1 %884, %v982_v22  }
  0x50   :  { %445 = vperm.xlu1 %884, %v28_v25  }
  0x54   :  { %886 = vset.pattern.permute.xlu1 %v897_v34 }
  0x55   :  { %461 = vperm.xlu1 %886, %v982_v22  }
  0x59   :  { %469 = vperm.xlu1 %886, %v28_v25  }
  0x86   :  { %v99_v35 = vpop.permute.xlu1 %98 }
  0x87   :  { %v1027_v42 = vpop.permute.xlu0 %259 }
  0x8c   :  { %v1015_v36 = vpop.permute.xlu1 %254 }
  0x8d   :  { %v1031_v44 = vpop.permute.xlu0 %278 }
  0x90   :  { %v1017_v37 = vpop.permute.xlu1 %264 }
  0x92   :  { %v1035_v46 = vpop.permute.xlu0 %302 }
  0x95   :  { %v1019_v38 = vpop.permute.xlu1 %274 }
  0x97   :  { %v89_v48 = vpop.permute.xlu0 %88 }
  0x99   :  { %v1021_v39 = vpop.permute.xlu1 %282 }
  0x9b   :  { %v1041_v50 = vpop.permute.xlu0 %93 }
  0x9e   :  { %v1023_v40 = vpop.permute.xlu1 %298 }
  0x9f   :  { %v1045_v52 = vpop.permute.xlu0 %326 }
  0xa2   :  { %v1025_v41 = vpop.permute.xlu1 %306 }
  0xa3   :  { %1709 = vst [vmem:[#allocation2_spill] sm:$0xff] %v1025_v41 }
  0xa4   :  { %v1049_v54 = vpop.permute.xlu0 %344 }
  0xa7   :  { %v1029_v43 = vpop.permute.xlu1 %322 }
  0xa9   :  { %v1053_v56 = vpop.permute.xlu0 %368 }
  0xab   :  { %v1033_v45 = vpop.permute.xlu1 %330 }
  0xac   :  { %1710 = vst [vmem:[#allocation3_spill] sm:$0xff] %v1033_v45 }
  0xae   :  { %v1057_v0 = vpop.permute.xlu0 %423 }
  0xb0   :  { %v1037_v47 = vpop.permute.xlu1 %340 }
  0xb3   :  { %v1073_v13 = vpop.permute.xlu0 %441 }
  0xb4   :  { %v1039_v49 = vpop.permute.xlu1 %348 }
  0xb9   :  { %v1043_v51 = vpop.permute.xlu1 %364 }
  0xbd   :  { %v1047_v53 = vpop.permute.xlu1 %372 }
  0xbe   :  { %1711 = vst [vmem:[#allocation4_spill] sm:$0xff] %v1047_v53 }
  0xc2   :  { %v1051_v55 = vpop.permute.xlu1 %419 }
  0xc6   :  { %v1055_v57 = vpop.permute.xlu1 %427 }
  0xcb   :  { %v1065_v7 = vpop.permute.xlu1 %437 }
  0xcf   :  { %v446_v23 = vpop.permute.xlu1 %445 }
  0xdd   :  { %v177_v58 = vpop.f32.mrb[0].mxu0 }
  0xde   :  { %v178_v59 = vadd.f32 %v177_v58, %v89_v48  ;;  %v594_v60 = vpop.f32.mrb[0].mxu1  ;;  %v179_v61 = vpop.f32.mrb[1].mxu0 }
  0xdf   :  { %v180_v62 = vadd.f32 %v179_v61, %v89_v48  ;;  %v596_v63 = vpop.f32.mrb[1].mxu1  ;;  %v595_v6 = vadd.f32 %v594_v60, %v89_v48 }
  0xe0   :  { %v1059_v1 = vmax.f32 %v178_v59, 0.0  ;;  %v597_v10 = vadd.f32 %v596_v63, %v89_v48 }
  0xe1   :  { %v1061_v2 = vmax.f32 %v180_v62, 0.0  ;;  %v183_v3 = vpop.f32.mrb[2].mxu0  ;;  %v1079_v19 = vmax.f32 %v595_v6, 0.0 }
  0xe2   :  { %v600_v4 = vpop.f32.mrb[2].mxu1  ;;  %v185_v5 = vpop.f32.mrb[3].mxu0  ;;  %200 = vrot.lane.b32.xlu1 %v1059_v1, %s898_s2  ;;  %v1083_v24 = vmax.f32 %v597_v10, 0.0  ;;  %v184_v63 = vadd.f32 %v183_v3, %v1041_v50 }
  0xe3   :  { %v601_v8 = vadd.f32 %v600_v4, %v1041_v50  ;;  %v602_v9 = vpop.f32.mrb[3].mxu1  ;;  %206 = vrot.lane.b32.xlu0 %v1061_v2, %s898_s2  ;;  %v186_v60 = vadd.f32 %v185_v5, %v1041_v50  ;;  %v1181_v5 = vpop.permute.xlu0 %465 }
  0xe4   :  { %v603_v11 = vadd.f32 %v602_v9, %v1041_v50  ;;  %v1145_v6 = vmax.f32 %v184_v63, 0.0  ;;  %v1179_v50 = vpop.permute.xlu1 %461  ;;  %1723 = vst [vmem:[#allocation16_spill] sm:$0xff] %v1181_v5 }
  0xe5   :  { %v1071_v12 = vmax.f32 %v601_v8, 0.0  ;;  %v189_v14 = vpop.f32.mrb[4].mxu0  ;;  %v1143_v4 = vmax.f32 %v186_v60, 0.0 }
  0xe6   :  { %v1075_v15 = vmax.f32 %v603_v11, 0.0  ;;  %227 = vrot.lane.b32.xlu1 %v1059_v1, %s899_s7  ;;  %v190_v16 = vadd.f32 %v189_v14, %v99_v35  ;;  %v606_v17 = vpop.f32.mrb[4].mxu1  ;;  %v191_v18 = vpop.f32.mrb[5].mxu0  ;;  %v29_v14 = vld [vmem:[%s1698_s4] ss:$4 sm:$0x3] }
  0xe7   :  { %233 = vrot.lane.b32.xlu0 %v1061_v2, %s899_s7  ;;  %v607_v20 = vadd.f32 %v606_v17, %v99_v35  ;;  %v192_v21 = vadd.f32 %v191_v18, %v99_v35  ;;  %v608_v22 = vpop.f32.mrb[5].mxu1  ;;  %v1097_v30 = vmul.f32 %v1071_v12, %v1049_v54  ;;  %v826_v18 = vld [vmem:[%s1698_s4 + $0x1] ss:$4 sm:$0x3] }
  0xe8   :  { %v1087_v25 = vmul.f32 %v1075_v15, %v1073_v13  ;;  %v1089_v26 = vmax.f32 %v190_v16, 0.0  ;;  %v609_v27 = vadd.f32 %v608_v22, %v99_v35  ;;  %v1101_v31 = vmul.f32 %v1075_v15, %v1049_v54  ;;  %v1189_v11 = vpop.permute.xlu1 %469 }
  0xe9   :  { %v1091_v28 = vmax.f32 %v607_v20, 0.0  ;;  %v1093_v29 = vmax.f32 %v192_v21, 0.0  ;;  %1713 = vst [vmem:[#allocation6_spill] sm:$0xff] %v1097_v30  ;;  %1726 = vst [vmem:[#allocation19_spill] sm:$0xff] %v1189_v11 }
  0xea   :  { %1712 = vst [vmem:[#allocation5_spill] sm:$0xff] %v1087_v25  ;;  %1714 = vst [vmem:[#allocation7_spill] sm:$0xff] %v1101_v31  ;;  %617 = vrot.lane.b32.xlu1 %v1079_v19, %s898_s2  ;;  %v1105_v32 = vmax.f32 %v609_v27, 0.0  ;;  %v1108_v33 = vmul.f32 %v446_v23, %v1089_v26  ;;  %v1112_v34 = vmul.f32 %v1039_v49, %v1089_v26 }
  0xeb   :  { %623 = vrot.lane.b32.xlu0 %v1083_v24, %s898_s2  ;;  %v1117_v35 = vmul.f32 %v446_v23, %v1093_v29  ;;  %v1120_v48 = vmul.f32 %v1091_v28, %v446_v23  ;;  %v1124_v58 = vmul.f32 %v1039_v49, %v1093_v29  ;;  %v1128_v59 = vmul.f32 %v1091_v28, %v1039_v49 }
  0xec   :  { %1715 = vst [vmem:[#allocation8_spill] sm:$0xff] %v1108_v33  ;;  %1716 = vst [vmem:[#allocation9_spill] sm:$0xff] %v1112_v34  ;;  %v1132_v61 = vmul.f32 %v1105_v32, %v446_v23  ;;  %v1136_v62 = vmul.f32 %v1105_v32, %v1039_v49  ;;  %v31_v49 = vlaneseq  ;;  %v1239_v34 = vmul.f32 %v1065_v7, %v1059_v1 }
  0xed   :  { %1717 = vst [vmem:[#allocation10_spill] sm:$0xff] %v1117_v35  ;;  %1718 = vst [vmem:[#allocation11_spill] sm:$0xff] %v1120_v48 }
  0xee   :  { %1719 = vst [vmem:[#allocation12_spill] sm:$0xff] %v1124_v58  ;;  %1720 = vst [vmem:[#allocation13_spill] sm:$0xff] %v1128_v59  ;;  %641 = vrot.lane.b32.xlu1 %v1079_v19, %s899_s7  ;;  %v32_v3 = vshrl.u32 %v31_v49, 7  ;;  %v1187_v10 = vand.u32 127, %v31_v49  ;;  %v286_v59 = vmul.f32 %v1019_v38, %v1061_v2  ;;  %v285_v58 = vmul.f32 %v1019_v38, %v1059_v1 }
  0xef   :  { %1721 = vst [vmem:[#allocation14_spill] sm:$0xff] %v1132_v61  ;;  %1722 = vst [vmem:[#allocation15_spill] sm:$0xff] %v1136_v62  ;;  %647 = vrot.lane.b32.xlu0 %v1083_v24, %s899_s7  ;;  %v1243_v61 = vmul.f32 %v1065_v7, %v1061_v2 }
  0xf0   :  { %v1183_v8 = vsub.s32 0, %v32_v3  ;;  %v1185_v9 = vsub.s32 1, %v32_v3  ;;  %vm214_vm1 = vcmp.lt.s32.totalorder %v1187_v10, 1  ;;  %vm239_vm2 = vcmp.lt.s32.totalorder %v1187_v10, 127 }
  0xf1   :  { %vm399_vm3 = vcmp.lt.s32.totalorder %v1187_v10, 16  ;;  %vm496_vm4 = vcmp.lt.s32.totalorder %v1187_v10, 112 }
  0xf2   :  { %208 = vrot.lane.b32.xlu1 %v1143_v4, %s898_s2  ;;  %1724 = vst [vmem:[#allocation17_spill] sm:$0xff] %v1183_v8  ;;  %1725 = vst [vmem:[#allocation18_spill] sm:$0xff] %v1185_v9  ;;  %v1195_v16 = vrot.slane %v29_v14, %v1183_v8  ;;  %v1198_v17 = vrot.slane %v29_v14, %v1185_v9  ;;  %v1209_v27 = vrot.slane %v826_v18, %v1183_v8 }
  0xf3   :  { %202 = vrot.lane.b32.xlu0 %v1145_v6, %s898_s2  ;;  %v1216_v49 = vrot.slane %v826_v18, %v1185_v9  ;;  %v352_v14 = vmul.f32 %v1037_v47, %v1061_v2  ;;  %v1253_v2 = vmul.f32 %v1079_v19, %v1065_v7 }
  0xf6   :  { %235 = vrot.lane.b32.xlu1 %v1143_v4, %s899_s7 }
  0xf7   :  { %229 = vrot.lane.b32.xlu0 %v1145_v6, %s899_s7 }
  0xfa   :  { %625 = vrot.lane.b32.xlu1 %v1075_v15, %s898_s2 }
  0xfb   :  { %619 = vrot.lane.b32.xlu0 %v1071_v12, %s898_s2 }
  0xfe   :  { %204 = vrot.lane.b32.xlu1 %v1089_v26, %s898_s2 }
  0xff   :  { %643 = vrot.lane.b32.xlu0 %v1071_v12, %s899_s7 }
 0x102   :  { %231 = vrot.lane.b32.xlu1 %v1089_v26, %s899_s7 }
 0x103   :  { %210 = vrot.lane.b32.xlu0 %v1093_v29, %s898_s2 }
 0x106   :  { %621 = vrot.lane.b32.xlu1 %v1091_v28, %s898_s2 }
 0x107   :  { %237 = vrot.lane.b32.xlu0 %v1093_v29, %s899_s7 }
 0x10a   :  { %645 = vrot.lane.b32.xlu1 %v1091_v28, %s899_s7 }
 0x10b   :  { %627 = vrot.lane.b32.xlu0 %v1105_v32, %s898_s2 }
 0x10e   :  { %649 = vrot.lane.b32.xlu1 %v1075_v15, %s899_s7 }
 0x10f   :  { %651 = vrot.lane.b32.xlu0 %v1105_v32, %s899_s7 }
 0x154   :  { %v201_v20 = vpop.permute.xlu1 %200 }
 0x155   :  { %v207_v21 = vpop.permute.xlu0 %206 }
 0x156   :  { %v215_v22 = vsel %vm214_vm1, %v201_v20, %v207_v21  ;;  %v218_v23 = vsel %vm214_vm1, %v207_v21, %v201_v20  ;;  %v351_v20 = vmul.f32 %v1037_v47, %v1059_v1 }
 0x157   :  { %v1212_v60 = vmul.f32 %v218_v23, %v1195_v16  ;;  %v222_v63 = vmul.f32 %v215_v22, %v1198_v17 }
 0x158   :  { %v228_v3 = vpop.permute.xlu1 %227 }
 0x159   :  { %v267_v21 = vmul.f32 %v1015_v36, %v1212_v60  ;;  %v268_v23 = vmul.f32 %v1015_v36, %v222_v63  ;;  %v333_v22 = vmul.f32 %v1029_v43, %v1212_v60  ;;  %v334_v18 = vmul.f32 %v1029_v43, %v222_v63  ;;  %v234_v9 = vpop.permute.xlu0 %233 }
 0x15a   :  { %v240_v8 = vsel %vm239_vm2, %v228_v3, %v234_v9  ;;  %v243_v62 = vsel %vm239_vm2, %v234_v9, %v228_v3 }
 0x15b   :  { %v246_v48 = vmul.f32 %v240_v8, %v1209_v27  ;;  %v247_v53 = vmul.f32 %v243_v62, %v1216_v49  ;;  %v358_v9 = vadd.f32 %v352_v14, %v334_v18  ;;  %v357_v3 = vadd.f32 %v351_v20, %v333_v22 }
 0x15c   :  { %v618_v45 = vpop.permute.xlu1 %617  ;;  %v292_v25 = vadd.f32 %v286_v59, %v268_v23  ;;  %v291_v31 = vadd.f32 %v285_v58, %v267_v21  ;;  %v1257_v62 = vmul.f32 %v1083_v24, %v1065_v7  ;;  %v702_v22 = vmul.f32 %v1083_v24, %v1037_v47 }
 0x15d   :  { %v309_v30 = vmul.f32 %v1023_v40, %v246_v48  ;;  %v310_v11 = vmul.f32 %v1023_v40, %v247_v53  ;;  %v624_v35 = vpop.permute.xlu0 %623  ;;  %v376_v1 = vmul.f32 %v1043_v51, %v247_v53  ;;  %v375_v33 = vmul.f32 %v1043_v51, %v246_v48 }
 0x15e   :  { %v629_v58 = vsel %vm214_vm1, %v618_v45, %v624_v35  ;;  %v632_v59 = vsel %vm214_vm1, %v624_v35, %v618_v45  ;;  %v701_v7 = vmul.f32 %v1079_v19, %v1037_v47 }
 0x15f   :  { %v635_v8 = vmul.f32 %v632_v59, %v1195_v16  ;;  %v636_v14 = vmul.f32 %v629_v58, %v1198_v17  ;;  %v382_v20 = vadd.f32 %v376_v1, %v358_v9  ;;  %v381_v21 = vadd.f32 %v375_v33, %v357_v3 }
 0x160   :  { %v642_v23 = vpop.permute.xlu1 %641  ;;  %v1269_v18 = vadd.f32 %v310_v11, %v292_v25  ;;  %v1271_v41 = vadd.f32 %v309_v30, %v291_v31  ;;  %v671_v25 = vmul.f32 %v1079_v19, %v1019_v38  ;;  %v1292_v11 = vmul.f32 %v1049_v54, %v1145_v6 }
 0x161   :  { %v665_v5 = vmul.f32 %v635_v8, %v1015_v36  ;;  %v666_v45 = vmul.f32 %v636_v14, %v1015_v36  ;;  %v695_v35 = vmul.f32 %v635_v8, %v1029_v43  ;;  %v696_v9 = vmul.f32 %v636_v14, %v1029_v43  ;;  %v648_v33 = vpop.permute.xlu0 %647  ;;  %393 = vrot.lane.b32.xlu0 %v382_v20, %s900_s12 }
 0x162   :  { %v653_v3 = vsel %vm239_vm2, %v642_v23, %v648_v33  ;;  %v656_v47 = vsel %vm239_vm2, %v648_v33, %v642_v23  ;;  %387 = vrot.lane.b32.xlu1 %v381_v21, %s900_s12  ;;  %v672_v36 = vmul.f32 %v1083_v24, %v1019_v38  ;;  %v431_v43 = vmul.f32 %v1051_v55, %v222_v63 }
 0x163   :  { %v659_v30 = vmul.f32 %v653_v3, %v1209_v27  ;;  %v660_v31 = vmul.f32 %v656_v47, %v1216_v49  ;;  %v708_v58 = vadd.f32 %v702_v22, %v696_v9  ;;  %v707_v59 = vadd.f32 %v701_v7, %v695_v35 }
 0x164   :  { %v209_v1 = vpop.permute.xlu1 %208  ;;  %v677_v20 = vadd.f32 %v671_v25, %v665_v5  ;;  %v678_v21 = vadd.f32 %v672_v36, %v666_v45  ;;  %v430_v33 = vmul.f32 %v1051_v55, %v1212_v60  ;;  %v354_v5 = vmul.f32 %v1049_v54, %v1143_v4 }
 0x165   :  { %v683_v19 = vmul.f32 %v659_v30, %v1023_v40  ;;  %v684_v23 = vmul.f32 %v660_v31, %v1023_v40  ;;  %v203_v38 = vpop.permute.xlu0 %202  ;;  %v714_v24 = vmul.f32 %v660_v31, %v1043_v51  ;;  %v713_v63 = vmul.f32 %v659_v30, %v1043_v51 }
 0x166   :  { %v216_v3 = vsel %vm214_vm1, %v203_v38, %v209_v1  ;;  %v219_v22 = vsel %vm214_vm1, %v209_v1, %v203_v38  ;;  %v473_v40 = vmul.f32 %v1179_v50, %v247_v53  ;;  %v287_v35 = vmul.f32 %v1031_v44, %v1145_v6 }
 0x167   :  { %v720_v7 = vadd.f32 %v714_v24, %v708_v58  ;;  %v719_v45 = vadd.f32 %v713_v63, %v707_v59  ;;  %v1310_v51 = vmul.f32 %v219_v22, %v1195_v16  ;;  %v472_v9 = vmul.f32 %v1179_v50, %v246_v48 }
 0x168   :  { %v236_v60 = vpop.permute.xlu1 %235  ;;  %v1313_v47 = vadd.f32 %v683_v19, %v677_v20  ;;  %v1315_v25 = vadd.f32 %v684_v23, %v678_v21  ;;  %v755_v36 = vmul.f32 %v635_v8, %v1051_v55  ;;  %v756_v54 = vmul.f32 %v636_v14, %v1051_v55 }
 0x169   :  { %v1320_v1 = vmul.f32 %v216_v3, %v1198_v17  ;;  %v230_v53 = vpop.permute.xlu0 %229  ;;  %731 = vrot.lane.b32.xlu0 %v720_v7, %s900_s12  ;;  %v455_v58 = vadd.f32 %v1243_v61, %v431_v43  ;;  %725 = vrot.lane.b32.xlu1 %v719_v45, %s900_s12  ;;  %v454_v8 = vadd.f32 %v1239_v34, %v430_v33 }
 0x16a   :  { %v241_v59 = vsel %vm239_vm2, %v230_v53, %v236_v60  ;;  %v244_v48 = vsel %vm239_vm2, %v236_v60, %v230_v53  ;;  %v288_v55 = vmul.f32 %v1031_v44, %v1143_v4  ;;  %v774_v21 = vmul.f32 %v660_v31, %v1179_v50 }
 0x16b   :  { %v1333_v14 = vmul.f32 %v241_v59, %v1209_v27  ;;  %v479_v20 = vadd.f32 %v473_v40, %v455_v58  ;;  %v673_v61 = vmul.f32 %v1071_v12, %v1031_v44  ;;  %v269_v43 = vmul.f32 %v1027_v42, %v1310_v51 }
 0x16c   :  { %v1341_v19 = vmul.f32 %v244_v48, %v1216_v49  ;;  %v626_v23 = vpop.permute.xlu1 %625  ;;  %v478_v34 = vadd.f32 %v472_v9, %v454_v8  ;;  %v773_v38 = vmul.f32 %v659_v30, %v1179_v50  ;;  %v270_v24 = vmul.f32 %v1027_v42, %v1320_v1 }
 0x16d   :  { %v335_v63 = vmul.f32 %v1045_v52, %v1310_v51  ;;  %v620_v31 = vpop.permute.xlu0 %619  ;;  %490 = vrot.lane.b32.xlu0 %v479_v20, %s901_s13  ;;  %v768_v33 = vadd.f32 %v1257_v62, %v756_v54  ;;  %v767_v3 = vadd.f32 %v1253_v2, %v755_v36  ;;  %v336_v22 = vmul.f32 %v1045_v52, %v1320_v1 }
 0x16e   :  { %v311_v50 = vmul.f32 %v1035_v46, %v1333_v14  ;;  %v630_v30 = vsel %vm214_vm1, %v620_v31, %v626_v23  ;;  %v633_v7 = vsel %vm214_vm1, %v626_v23, %v620_v31  ;;  %484 = vrot.lane.b32.xlu1 %v478_v34, %s901_s13  ;;  %v377_v40 = vmul.f32 %v1053_v56, %v1333_v14 }
 0x16f   :  { %v1361_v45 = vmul.f32 %v633_v7, %v1195_v16  ;;  %v1364_v62 = vmul.f32 %v630_v30, %v1198_v17  ;;  %v780_v2 = vadd.f32 %v774_v21, %v768_v33  ;;  %v312_v60 = vmul.f32 %v1035_v46, %v1341_v19 }
 0x170   :  { %v205_v9 = vpop.permute.xlu1 %204  ;;  %v779_v36 = vadd.f32 %v773_v38, %v767_v3  ;;  %v378_v54 = vmul.f32 %v1053_v56, %v1341_v19  ;;  %v293_v53 = vadd.f32 %v287_v35, %v269_v43  ;;  %v359_v8 = vadd.f32 %v1292_v11, %v335_v63 }
 0x171   :  { %v667_v58 = vmul.f32 %v1361_v45, %v1027_v42  ;;  %v668_v59 = vmul.f32 %v1364_v62, %v1027_v42  ;;  %v1376_v48 = vpop.permute.xlu0 %643  ;;  %791 = vrot.lane.b32.xlu0 %v780_v2, %s901_s13  ;;  %v674_v20 = vmul.f32 %v1075_v15, %v1031_v44  ;;  %v360_v21 = vadd.f32 %v354_v5, %v336_v22 }
 0x172   :  { %785 = vrot.lane.b32.xlu1 %v779_v36, %s901_s13  ;;  %v294_v23 = vadd.f32 %v288_v55, %v270_v24  ;;  %v1383_v35 = vadd.f32 %v311_v50, %v293_v53  ;;  %v383_v43 = vadd.f32 %v377_v40, %v359_v8  ;;  %v450_v11 = vmul.f32 %v1073_v13, %v1145_v6 }
 0x173   :  { %v1385_v34 = vadd.f32 %v673_v61, %v667_v58  ;;  %v1387_v38 = vadd.f32 %v674_v20, %v668_v59  ;;  %v384_v31 = vadd.f32 %v378_v54, %v360_v21  ;;  %v451_v5 = vmul.f32 %v1073_v13, %v1143_v4  ;;  %v1728_v59 = vld [vmem:[#allocation2_spill] sm:$0xff]  ;;  %v1729_v21 = vld [vmem:[#allocation8_spill] sm:$0xff] }
 0x174   :  { %v232_v42 = vpop.permute.xlu1 %231  ;;  %v1389_v33 = vadd.f32 %v312_v60, %v294_v23  ;;  %v1409_v24 = vmul.f32 %v1071_v12, %v1073_v13  ;;  %v289_v22 = vmul.f32 %v1021_v39, %v1089_v26  ;;  %v290_v6 = vmul.f32 %v1021_v39, %v1093_v29 }
 0x175   :  { %v211_v3 = vpop.permute.xlu0 %210  ;;  %389 = vrot.lane.b32.xlu0 %v383_v43, %s900_s12  ;;  %v1417_v4 = vmul.f32 %v1091_v28, %v1021_v39  ;;  %v432_v50 = vmul.f32 %v1057_v0, %v1310_v51  ;;  %v1427_v26 = vmul.f32 %v1105_v32, %v1021_v39  ;;  %v433_v2 = vmul.f32 %v1057_v0, %v1320_v1  ;;  %v1727_v32 = vld [vmem:[#allocation16_spill] sm:$0xff]  ;;  %v1730_v43 = vld [vmem:[#allocation10_spill] sm:$0xff] }
 0x176   :  { %v217_v44 = vsel %vm214_vm1, %v205_v9, %v211_v3  ;;  %v220_v15 = vsel %vm214_vm1, %v211_v3, %v205_v9  ;;  %395 = vrot.lane.b32.xlu1 %v384_v31, %s900_s12  ;;  %v474_v60 = vmul.f32 %v1727_v32, %v1333_v14  ;;  %v697_v9 = vmul.f32 %v1361_v45, %v1045_v52  ;;  %v1731_v3 = vld [vmem:[#allocation19_spill] sm:$0xff] }
 0x177   :  { %v1402_v55 = vmul.f32 %v220_v15, %v1195_v16  ;;  %v1405_v61 = vmul.f32 %v217_v44, %v1198_v17  ;;  %v475_v54 = vmul.f32 %v1727_v32, %v1341_v19  ;;  %v698_v15 = vmul.f32 %v1364_v62, %v1045_v52 }
 0x178   :  { %v622_v63 = vpop.permute.xlu1 %621 }
 0x179   :  { %v271_v30 = vmul.f32 %v1017_v37, %v1402_v55  ;;  %v272_v12 = vmul.f32 %v1017_v37, %v1405_v61  ;;  %v238_v13 = vpop.permute.xlu0 %237  ;;  %v434_v29 = vmul.f32 %v1055_v57, %v1402_v55  ;;  %v435_v28 = vmul.f32 %v1055_v57, %v1405_v61 }
 0x17a   :  { %v242_v51 = vsel %vm239_vm2, %v232_v42, %v238_v13  ;;  %v245_v7 = vsel %vm239_vm2, %v238_v13, %v232_v42 }
 0x17b   :  { %v250_v40 = vmul.f32 %v242_v51, %v1209_v27  ;;  %v1441_v39 = vmul.f32 %v245_v7, %v1216_v49  ;;  %v295_v53 = vadd.f32 %v289_v22, %v271_v30  ;;  %v296_v58 = vadd.f32 %v290_v6, %v272_v12 }
 0x17c   :  { %v646_v36 = vpop.permute.xlu1 %645  ;;  %v458_v23 = vadd.f32 %v1729_v21, %v434_v29  ;;  %v459_v42 = vadd.f32 %v1730_v43, %v435_v28  ;;  %v456_v6 = vadd.f32 %v450_v11, %v432_v50  ;;  %v457_v30 = vadd.f32 %v451_v5, %v433_v2  ;;  %v1732_v50 = vld [vmem:[#allocation6_spill] sm:$0xff] }
 0x17d   :  { %v313_v8 = vmul.f32 %v1728_v59, %v250_v40  ;;  %v314_v1 = vmul.f32 %v1728_v59, %v1441_v39  ;;  %v628_v20 = vpop.permute.xlu0 %627  ;;  %v476_v19 = vmul.f32 %v1731_v3, %v250_v40  ;;  %v477_v44 = vmul.f32 %v1731_v3, %v1441_v39 }
 0x17e   :  { %v631_v14 = vsel %vm214_vm1, %v622_v63, %v628_v20  ;;  %v634_v31 = vsel %vm214_vm1, %v628_v20, %v622_v63  ;;  %v758_v51 = vmul.f32 %v1364_v62, %v1057_v0  ;;  %v480_v52 = vadd.f32 %v474_v60, %v456_v6 }
 0x17f   :  { %v639_v22 = vmul.f32 %v634_v31, %v1195_v16  ;;  %v1464_v13 = vadd.f32 %v476_v19, %v458_v23  ;;  %v1466_v29 = vadd.f32 %v477_v44, %v459_v42  ;;  %v1468_v28 = vadd.f32 %v313_v8, %v295_v53  ;;  %v1734_v23 = vld [vmem:[#allocation5_spill] sm:$0xff]  ;;  %v1735_v42 = vld [vmem:[#allocation3_spill] sm:$0xff] }
 0x180   :  { %v650_v12 = vpop.permute.xlu1 %649  ;;  %v1470_v63 = vadd.f32 %v314_v1, %v296_v58  ;;  %v640_v7 = vmul.f32 %v631_v14, %v1198_v17  ;;  %v481_v21 = vadd.f32 %v475_v54, %v457_v30  ;;  %v757_v16 = vmul.f32 %v1361_v45, %v1057_v0  ;;  %v1733_v58 = vld [vmem:[#allocation7_spill] sm:$0xff] }
 0x181   :  { %v652_v20 = vpop.permute.xlu0 %651  ;;  %v654_v11 = vsel %vm239_vm2, %v1376_v48, %v650_v12  ;;  %v657_v5 = vsel %vm239_vm2, %v650_v12, %v1376_v48  ;;  %v709_v2 = vadd.f32 %v1732_v50, %v697_v9  ;;  %v759_v45 = vmul.f32 %v639_v22, %v1055_v57  ;;  %v1737_v30 = vld [vmem:[#allocation11_spill] sm:$0xff] }
 0x182   :  { %v661_v62 = vmul.f32 %v654_v11, %v1209_v27  ;;  %v662_v17 = vmul.f32 %v657_v5, %v1216_v49  ;;  %v655_v60 = vsel %vm239_vm2, %v646_v36, %v652_v20  ;;  %v658_v0 = vsel %vm239_vm2, %v652_v20, %v646_v36 }
 0x183   :  { %v663_v54 = vmul.f32 %v655_v60, %v1209_v27  ;;  %v664_v53 = vmul.f32 %v658_v0, %v1216_v49  ;;  %v710_v48 = vadd.f32 %v1733_v58, %v698_v15  ;;  %v760_v9 = vmul.f32 %v640_v7, %v1055_v57  ;;  %v1736_v57 = vld [vmem:[#allocation4_spill] sm:$0xff] }
 0x184   :  { %v715_v8 = vmul.f32 %v661_v62, %v1053_v56  ;;  %v716_v1 = vmul.f32 %v662_v17, %v1053_v56  ;;  %v770_v43 = vadd.f32 %v1734_v23, %v758_v51  ;;  %v337_v14 = vmul.f32 %v1735_v42, %v1402_v55  ;;  %v1738_v51 = vld [vmem:[#allocation14_spill] sm:$0xff] }
 0x185   :  { %v669_v36 = vmul.f32 %v639_v22, %v1017_v37  ;;  %v685_v31 = vmul.f32 %v661_v62, %v1035_v46  ;;  %v686_v27 = vmul.f32 %v662_v17, %v1035_v46  ;;  %v670_v49 = vmul.f32 %v640_v7, %v1017_v37 }
 0x186   :  { %v721_v19 = vadd.f32 %v715_v8, %v709_v2  ;;  %v722_v44 = vadd.f32 %v716_v1, %v710_v48  ;;  %v379_v15 = vmul.f32 %v1736_v57, %v250_v40  ;;  %v687_v6 = vmul.f32 %v663_v54, %v1728_v59 }
 0x187   :  { %v688_v56 = vmul.f32 %v664_v53, %v1728_v59  ;;  %v771_v12 = vadd.f32 %v1737_v30, %v759_v45  ;;  %v777_v55 = vmul.f32 %v663_v54, %v1731_v3  ;;  %v772_v46 = vadd.f32 %v1738_v51, %v760_v9 }
 0x188   :  { %727 = vrot.lane.b32.xlu0 %v721_v19, %s900_s12  ;;  %733 = vrot.lane.b32.xlu1 %v722_v44, %s900_s12  ;;  %v778_v37 = vmul.f32 %v664_v53, %v1731_v3  ;;  %v776_v20 = vmul.f32 %v662_v17, %v1727_v32  ;;  %v1515_v40 = vadd.f32 %v685_v31, %v1385_v34 }
 0x189   :  { %v783_v11 = vadd.f32 %v777_v55, %v771_v12  ;;  %v1518_v59 = vadd.f32 %v686_v27, %v1387_v38  ;;  %v681_v5 = vadd.f32 %v1417_v4, %v669_v36  ;;  %v775_v50 = vmul.f32 %v661_v62, %v1727_v32  ;;  %v1739_v38 = vld [vmem:[#allocation9_spill] sm:$0xff]  ;;  %v828_v27 = vld [vmem:[%s1698_s4 + $0x3] ss:$4 sm:$0x3] }
 0x18a   :  { %v784_v2 = vadd.f32 %v778_v37, %v772_v46  ;;  %v782_v60 = vadd.f32 %v776_v20, %v770_v43  ;;  %v682_v0 = vadd.f32 %v1427_v26, %v670_v49  ;;  %v338_v3 = vmul.f32 %v1735_v42, %v1405_v61  ;;  %v1743_v43 = vld [vmem:[#allocation17_spill] sm:$0xff] }
 0x18b   :  { %v769_v17 = vadd.f32 %v1409_v24, %v757_v16  ;;  %v1526_v45 = vadd.f32 %v687_v6, %v681_v5  ;;  %v699_v34 = vmul.f32 %v639_v22, %v1735_v42  ;;  %v361_v4 = vadd.f32 %v1739_v38, %v337_v14  ;;  %v1740_v22 = vld [vmem:[#allocation12_spill] sm:$0xff] }
 0x18c   :  { %486 = vrot.lane.b32.xlu0 %v480_v52, %s901_s13  ;;  %492 = vrot.lane.b32.xlu1 %v481_v21, %s901_s13  ;;  %v1532_v32 = vadd.f32 %v688_v56, %v682_v0  ;;  %v380_v26 = vmul.f32 %v1736_v57, %v1441_v39  ;;  %v717_v61 = vmul.f32 %v663_v54, %v1736_v57  ;;  %v1741_v21 = vld [vmem:[#allocation13_spill] sm:$0xff]  ;;  %v1742_v39 = vld [vmem:[#allocation15_spill] sm:$0xff] }
 0x18d   :  { %v781_v62 = vadd.f32 %v775_v50, %v769_v17  ;;  %v385_v58 = vadd.f32 %v379_v15, %v361_v4  ;;  %v700_v24 = vmul.f32 %v640_v7, %v1735_v42  ;;  %v362_v52 = vadd.f32 %v1740_v22, %v338_v3  ;;  %v827_v7 = vld [vmem:[%s1698_s4 + $0x2] ss:$4 sm:$0x3] }
 0x18e   :  { %v711_v16 = vadd.f32 %v1741_v21, %v699_v34  ;;  %v718_v8 = vmul.f32 %v664_v53, %v1736_v57  ;;  %v1559_v42 = vrot.slane %v827_v7, %v1743_v43  ;;  %v1574_v57 = vrot.slane %v828_v27, %v1743_v43 }
 0x18f   :  { %v386_v48 = vadd.f32 %v380_v26, %v362_v52  ;;  %v712_v54 = vadd.f32 %v1742_v39, %v700_v24 }
 0x190   :  { %787 = vrot.lane.b32.xlu0 %v781_v62, %s901_s13  ;;  %391 = vrot.lane.b32.xlu1 %v385_v58, %s900_s12  ;;  %v723_v9 = vadd.f32 %v717_v61, %v711_v16 }
 0x191   :  { %v724_v1 = vadd.f32 %v718_v8, %v712_v54 }
 0x194   :  { %397 = vrot.lane.b32.xlu0 %v386_v48, %s900_s12  ;;  %729 = vrot.lane.b32.xlu1 %v723_v9, %s900_s12 }
 0x198   :  { %735 = vrot.lane.b32.xlu0 %v724_v1, %s900_s12  ;;  %488 = vrot.lane.b32.xlu1 %v1464_v13, %s901_s13  ;;  %v1744_v13 = vld [vmem:[#allocation18_spill] sm:$0xff] }
 0x199   :  { %v1562_v14 = vrot.slane %v827_v7, %v1744_v13  ;;  %v1577_v15 = vrot.slane %v828_v27, %v1744_v13 }
 0x19c   :  { %494 = vrot.lane.b32.xlu0 %v1466_v29, %s901_s13  ;;  %789 = vrot.lane.b32.xlu1 %v783_v11, %s901_s13 }
 0x1a0   :  { %795 = vrot.lane.b32.xlu0 %v784_v2, %s901_s13  ;;  %793 = vrot.lane.b32.xlu1 %v782_v60, %s901_s13 }
 0x1d3   :  { %v394_v53 = vpop.permute.xlu0 %393 }
 0x1d4   :  { %v388_v23 = vpop.permute.xlu1 %387 }
 0x1d5   :  { %v400_v29 = vsel %vm399_vm3, %v388_v23, %v394_v53  ;;  %v403_v36 = vsel %vm399_vm3, %v394_v53, %v388_v23 }
 0x1d6   :  { %v406_v19 = vmul.f32 %v403_v36, %v1559_v42  ;;  %v407_v44 = vmul.f32 %v400_v29, %v1562_v14 }
 0x1d8   :  { %v412_v55 = vadd.f32 %v406_v19, %v1271_v41  ;;  %v413_v51 = vadd.f32 %v407_v44, %v1269_v18 }
 0x1db   :  { %v732_v31 = vpop.permute.xlu0 %731  ;;  %v726_v49 = vpop.permute.xlu1 %725 }
 0x1dc   :  { %v737_v6 = vsel %vm399_vm3, %v726_v49, %v732_v31  ;;  %v740_v56 = vsel %vm399_vm3, %v732_v31, %v726_v49 }
 0x1dd   :  { %v743_v20 = vmul.f32 %v740_v56, %v1559_v42  ;;  %v744_v11 = vmul.f32 %v737_v6, %v1562_v14 }
 0x1df   :  { %v491_v30 = vpop.permute.xlu0 %490  ;;  %v749_v17 = vadd.f32 %v743_v20, %v1313_v47  ;;  %v750_v34 = vadd.f32 %v744_v11, %v1315_v25 }
 0x1e0   :  { %v485_v12 = vpop.permute.xlu1 %484 }
 0x1e1   :  { %v497_v46 = vsel %vm496_vm4, %v485_v12, %v491_v30  ;;  %v500_v37 = vsel %vm496_vm4, %v491_v30, %v485_v12 }
 0x1e2   :  { %v503_v5 = vmul.f32 %v497_v46, %v1574_v57  ;;  %v504_v50 = vmul.f32 %v500_v37, %v1577_v15 }
 0x1e3   :  { %v792_v2 = vpop.permute.xlu0 %791 }
 0x1e4   :  { %v509_v60 = vadd.f32 %v503_v5, %v412_v55  ;;  %v510_v0 = vadd.f32 %v504_v50, %v413_v51  ;;  %v786_v41 = vpop.permute.xlu1 %785 }
 0x1e5   :  { %v797_v18 = vsel %vm496_vm4, %v786_v41, %v792_v2  ;;  %v800_v3 = vsel %vm496_vm4, %v792_v2, %v786_v41 }
 0x1e6   :  { %515 = vst [vmem:[%s1699_s5] sm:$0xff] %v509_v60  ;;  %516 = vst [vmem:[%s1699_s5 + $0x8] sm:$0xff] %v510_v0  ;;  %v803_v38 = vmul.f32 %v797_v18, %v1574_v57  ;;  %v804_v4 = vmul.f32 %v800_v3, %v1577_v15 }
 0x1e7   :  { %v390_v47 = vpop.permute.xlu0 %389 }
 0x1e8   :  { %v809_v62 = vadd.f32 %v803_v38, %v749_v17  ;;  %v810_v58 = vadd.f32 %v804_v4, %v750_v34  ;;  %v396_v25 = vpop.permute.xlu1 %395 }
 0x1e9   :  { %v401_v26 = vsel %vm399_vm3, %v390_v47, %v396_v25  ;;  %v404_v61 = vsel %vm399_vm3, %v396_v25, %v390_v47 }
 0x1ea   :  { %841 = vst [vmem:[%s1699_s5 + $0x30] sm:$0xff] %v809_v62  ;;  %842 = vst [vmem:[%s1699_s5 + $0x38] sm:$0xff] %v810_v58  ;;  %v408_v52 = vmul.f32 %v404_v61, %v1559_v42  ;;  %v409_v21 = vmul.f32 %v401_v26, %v1562_v14 }
 0x1ec   :  { %v414_v39 = vadd.f32 %v408_v52, %v1383_v35  ;;  %v415_v54 = vadd.f32 %v409_v21, %v1389_v33 }
 0x1fa   :  { %v728_v24 = vpop.permute.xlu0 %727  ;;  %v734_v22 = vpop.permute.xlu1 %733 }
 0x1fb   :  { %v738_v31 = vsel %vm399_vm3, %v728_v24, %v734_v22  ;;  %v741_v27 = vsel %vm399_vm3, %v734_v22, %v728_v24 }
 0x1fc   :  { %v745_v12 = vmul.f32 %v741_v27, %v1559_v42  ;;  %v746_v55 = vmul.f32 %v738_v31, %v1562_v14 }
 0x1fe   :  { %v487_v16 = vpop.permute.xlu0 %486  ;;  %v493_v48 = vpop.permute.xlu1 %492 }
 0x1ff   :  { %v498_v9 = vsel %vm496_vm4, %v487_v16, %v493_v48  ;;  %v501_v8 = vsel %vm496_vm4, %v493_v48, %v487_v16 }
 0x200   :  { %v505_v1 = vmul.f32 %v498_v9, %v1574_v57  ;;  %v506_v7 = vmul.f32 %v501_v8, %v1577_v15 }
 0x202   :  { %v511_v53 = vadd.f32 %v505_v1, %v414_v39  ;;  %v512_v23 = vadd.f32 %v506_v7, %v415_v54  ;;  %v788_v43 = vpop.permute.xlu0 %787  ;;  %v392_v13 = vpop.permute.xlu1 %391 }
 0x204   :  { %517 = vst [vmem:[%s1699_s5 + $0x10] sm:$0xff] %v511_v53  ;;  %518 = vst [vmem:[%s1699_s5 + $0x18] sm:$0xff] %v512_v23 }
 0x206   :  { %v398_v29 = vpop.permute.xlu0 %397  ;;  %v730_v35 = vpop.permute.xlu1 %729 }
 0x207   :  { %v402_v33 = vsel %vm399_vm3, %v392_v13, %v398_v29  ;;  %v405_v36 = vsel %vm399_vm3, %v398_v29, %v392_v13 }
 0x208   :  { %v410_v56 = vmul.f32 %v405_v36, %v1559_v42  ;;  %v411_v30 = vmul.f32 %v402_v33, %v1562_v14 }
 0x20a   :  { %v736_v49 = vpop.permute.xlu0 %735  ;;  %v489_v19 = vpop.permute.xlu1 %488  ;;  %v416_v50 = vadd.f32 %v410_v56, %v1468_v28  ;;  %v417_v2 = vadd.f32 %v411_v30, %v1470_v63 }
 0x20b   :  { %v739_v44 = vsel %vm399_vm3, %v730_v35, %v736_v49  ;;  %v742_v6 = vsel %vm399_vm3, %v736_v49, %v730_v35 }
 0x20c   :  { %v747_v51 = vmul.f32 %v742_v6, %v1559_v42  ;;  %v748_v46 = vmul.f32 %v739_v44, %v1562_v14  ;;  %v751_v42 = vadd.f32 %v745_v12, %v1515_v40  ;;  %v752_v14 = vadd.f32 %v746_v55, %v1518_v59 }
 0x20e   :  { %v495_v37 = vpop.permute.xlu0 %494  ;;  %v790_v20 = vpop.permute.xlu1 %789  ;;  %v753_v41 = vadd.f32 %v747_v51, %v1526_v45  ;;  %v754_v18 = vadd.f32 %v748_v46, %v1532_v32 }
 0x20f   :  { %v499_v11 = vsel %vm496_vm4, %v489_v19, %v495_v37  ;;  %v502_v5 = vsel %vm496_vm4, %v495_v37, %v489_v19 }
 0x210   :  { %v507_v60 = vmul.f32 %v499_v11, %v1574_v57  ;;  %v508_v0 = vmul.f32 %v502_v5, %v1577_v15 }
 0x212   :  { %v513_v3 = vadd.f32 %v507_v60, %v416_v50  ;;  %v514_v17 = vadd.f32 %v508_v0, %v417_v2  ;;  %v796_v34 = vpop.permute.xlu0 %795  ;;  %v794_v38 = vpop.permute.xlu1 %793 }
 0x213   :  { %v799_v28 = vsel %vm496_vm4, %v790_v20, %v796_v34  ;;  %v802_v63 = vsel %vm496_vm4, %v796_v34, %v790_v20  ;;  %v798_v4 = vsel %vm496_vm4, %v788_v43, %v794_v38  ;;  %v801_v40 = vsel %vm496_vm4, %v794_v38, %v788_v43 }
 0x214   :  { %519 = vst [vmem:[%s1699_s5 + $0x20] sm:$0xff] %v513_v3  ;;  %520 = vst [vmem:[%s1699_s5 + $0x28] sm:$0xff] %v514_v17  ;;  %v807_v59 = vmul.f32 %v799_v28, %v1574_v57  ;;  %v808_v45 = vmul.f32 %v802_v63, %v1577_v15  ;;  %v805_v32 = vmul.f32 %v798_v4, %v1574_v57 }
 0x215   :  { %v806_v62 = vmul.f32 %v801_v40, %v1577_v15 }
 0x216   :  { %v813_v58 = vadd.f32 %v807_v59, %v753_v41  ;;  %v814_v47 = vadd.f32 %v808_v45, %v754_v18  ;;  %v811_v10 = vadd.f32 %v805_v32, %v751_v42 }
 0x217   :  { %v812_v25 = vadd.f32 %v806_v62, %v752_v14 }
 0x218   :  { %845 = vst [vmem:[%s1699_s5 + $0x50] sm:$0xff] %v813_v58  ;;  %846 = vst [vmem:[%s1699_s5 + $0x58] sm:$0xff] %v814_v47 }
 0x219   :  { %843 = vst [vmem:[%s1699_s5 + $0x40] sm:$0xff] %v811_v10  ;;  %844 = vst [vmem:[%s1699_s5 + $0x48] sm:$0xff] %v812_v25 }

</bundles_post_ra>
